<compile_context>
chip_gen: v7x
topology: tpu7x:2x2x1
jax: 0.10.0
libtpu: 0.0.40
codegen_flags: <defaults>
</compile_context>

<pallas_src>
import functools
import math

import jax
import jax.numpy as jnp
from jax import lax
from jax.experimental import pallas as pl
from jax.experimental.pallas import tpu as pltpu

LANES = 128


def _round_up(x, m):
    return -(-x // m) * m


def _sublane_multiple(dtype):
    # f32 -> 8 rows, bf16 -> 16, int8/fp8/bool -> 32 (native packed tile).
    return max(8, 32 // max(1, jnp.dtype(dtype).itemsize))


def _is_v7x():
    try:
        kind = jax.devices()[0].device_kind.lower()
    except Exception:
        return False
    return "v7" in kind or "tpu7" in kind or "tpu 7" in kind


def _vfl_kernel(pred_ref, gt_ref, label_ref, out_ref, acc_ref, *,
                alpha, gamma, tiles_per_core, tm, rows_valid, needs_mask,
                approx_recip):
    """One (TM, 128) tile: accumulate sum(bce * weight) into a (1, 128) scratch."""
    i = pl.program_id(1)

    @pl.when(i == 0)
    def _init():
        acc_ref[...] = jnp.zeros_like(acc_ref)

    x = pred_ref[...].astype(jnp.float32)    # logits
    y = gt_ref[...].astype(jnp.float32)      # gt (quality) score
    lb = label_ref[...].astype(jnp.float32)  # label in {0, 1}

    if needs_mask:
        # Rows past the end of the (lane-padded) array hold undefined data.
        # Mask BEFORE exp/log: (x, y, label) = (0, 0, 1) gives weight == 0,
        # i.e. exactly zero contribution and no Inf/NaN from garbage bits.
        start_row = (pl.program_id(0) * tiles_per_core + i) * tm
        rows = start_row + lax.broadcasted_iota(jnp.int32, x.shape, 0)
        valid = rows < rows_valid
        x = jnp.where(valid, x, 0.0)
        y = jnp.where(valid, y, 0.0)
        lb = jnp.where(valid, lb, 1.0)

    # One shared exp feeds both the sigmoid and the BCE log term.
    e = jnp.exp(-jnp.abs(x))                 # in (0, 1]; never overflows
    one_p_e = 1.0 + e
    if approx_recip:
        inv = pl.reciprocal(one_p_e, approx=True)   # EUP vrcp (approx)
    else:
        inv = 1.0 / one_p_e
    sig = jnp.where(x >= 0.0, inv, e * inv)  # == sigmoid(x), both branches stable

    if gamma == 2.0:
        sig_pow = sig * sig
    elif float(gamma).is_integer() and gamma >= 1.0:
        sig_pow = sig
        for _ in range(int(gamma) - 1):
            sig_pow = sig_pow * sig
    else:
        # Non-integer gamma: exp/log fallback (adds 2 EUP ops per element).
        sig_pow = sig ** jnp.float32(gamma)

    weight = alpha * sig_pow * (1.0 - lb) + y * lb

    # Numerically-stable BCE-with-logits: max(x,0) - x*y + log(1 + exp(-|x|)).
    # log(1 + e) is used instead of log1p(e) for guaranteed Mosaic lowering;
    # the difference (< 1 ulp of 1.0, only when |x| > ~16 where bce ~ |x|) is
    # far below the f32 accumulation noise of the reduction.
    bce = jnp.maximum(x, 0.0) - x * y + jnp.log(one_p_e)

    # Per-step partial reduction: vreg adds + one sublane reduce (XLU) per step;
    # avoids a full-tile accumulator read+write every grid step.
    acc_ref[...] += jnp.sum(bce * weight, axis=0, keepdims=True)

    @pl.when(i == pl.num_programs(1) - 1)
    def _finalize():
        out_ref[...] = acc_ref[...].reshape(1, 1, LANES)


def varifocal_loss_pallas(pred_score, gt_score, label, alpha=0.75, gamma=2.0,
                          tm=4096, num_cores=None, approx_recip=True):
    """Varifocal loss forward; pred_score/gt_score/label share shape (B, N, C)."""
    assert pred_score.shape == gt_score.shape == label.shape
    assert pred_score.ndim >= 2
    mean_dim = pred_score.shape[1]      # torch: .mean(1).sum() == total / shape[1]

    v7x = _is_v7x()
    if num_cores is None:
        num_cores = 2 if v7x else 1     # only v7x has 2 TCs worth splitting over

    T = math.prod(pred_score.shape)
    sub = max(_sublane_multiple(a.dtype) for a in (pred_score, gt_score, label))

    # Lane padding only: at most sub*128 - 1 extra elements (<= 4 KiB).
    # Padding with (pred=0, gt=0, label=1) contributes exactly zero to the loss.
    pad = (-T) % (sub * LANES)
    xf, yf, lf = (a.reshape(-1) for a in (pred_score, gt_score, label))
    if pad:
        xf = jnp.pad(xf, (0, pad))
        yf = jnp.pad(yf, (0, pad))
        lf = jnp.pad(lf, (0, pad), constant_values=1)
    R = (T + pad) // LANES              # rows of the (R, 128) slab; multiple of sub
    x2 = xf.reshape(R, LANES)
    y2 = yf.reshape(R, LANES)
    l2 = lf.reshape(R, LANES)

    rows_per_core = _round_up(-(-R // num_cores), sub)
    tm_eff = min(_round_up(tm, sub), rows_per_core)          # tm_eff <= R always
    tiles_per_core = -(-rows_per_core // tm_eff)

    grid_rows = num_cores * tiles_per_core * tm_eff
    needs_mask = grid_rows > R          # grid over-covers the array -> mask rows
    max_block = (R - 1) // tm_eff
    clamp = (num_cores * tiles_per_core - 1) > max_block      # a fully-OOB block exists

    def in_idx(c, i):
        b = c * tiles_per_core + i
        if clamp:                       # keep every DMA inside the array
            b = jnp.minimum(b, max_block)
        return (b, 0)

    kernel = functools.partial(
        _vfl_kernel, alpha=float(alpha), gamma=float(gamma),
        tiles_per_core=tiles_per_core, tm=tm_eff, rows_valid=R,
        needs_mask=needs_mask, approx_recip=approx_recip)

    if num_cores > 1:
        core_dim = getattr(pltpu, "CORE_PARALLEL", "parallel") if v7x else "parallel"
    else:
        core_dim = "arbitrary"

    bytes_accessed = int(sum(a.size * a.dtype.itemsize for a in (x2, y2, l2))
                         + num_cores * LANES * 4)
    cost = pl.CostEstimate(flops=15 * int(x2.size),
                           transcendentals=3 * int(x2.size),
                           bytes_accessed=bytes_accessed)

    partials = pl.pallas_call(
        kernel,
        out_shape=jax.ShapeDtypeStruct((num_cores, 1, LANES), jnp.float32),
        grid_spec=pltpu.PrefetchScalarGridSpec(
            num_scalar_prefetch=0,
            grid=(num_cores, tiles_per_core),
            in_specs=[
                pl.BlockSpec((tm_eff, LANES), in_idx),
                pl.BlockSpec((tm_eff, LANES), in_idx),
                pl.BlockSpec((tm_eff, LANES), in_idx),
            ],
            out_specs=pl.BlockSpec((1, 1, LANES), lambda c, i: (c, 0, 0)),
            scratch_shapes=[pltpu.VMEM((1, LANES), jnp.float32)],
        ),
        compiler_params=pltpu.CompilerParams(
            dimension_semantics=(core_dim, "arbitrary"),
            vmem_limit_bytes=32 * 1024 * 1024),
        cost_estimate=cost,
    )(x2, y2, l2)

    # Glue: reduce the lane-dense per-core partials and apply the mean(1) divisor.
    return jnp.sum(partials) / jnp.float32(mean_dim)


# -------------------- plain-JAX reference (for verification) --------------------
def varifocal_loss_ref(pred_score, gt_score, label, alpha=0.75, gamma=2.0):
    p = pred_score.astype(jnp.float32)
    g = gt_score.astype(jnp.float32)
    l = label.astype(jnp.float32)
    weight = alpha * jax.nn.sigmoid(p) ** gamma * (1.0 - l) + g * l
    bce = jnp.maximum(p, 0.0) - p * g + jnp.log1p(jnp.exp(-jnp.abs(p)))
    return (bce * weight).mean(1).sum()


if __name__ == "__main__":
    key = jax.random.PRNGKey(0)
    k1, k2, k3, k4, k5 = jax.random.split(key, 5)

    # Detector-like shape: (batch, anchors, classes).
    B, N, C = 2, 200, 80
    pred_score = jax.random.normal(k1, (B, N, C), jnp.float32) * 2.0
    cls = jax.random.randint(k2, (B, N), 0, C)
    label = jax.nn.one_hot(cls, C, dtype=jnp.float32)
    gt_score = label * jax.random.uniform(k3, (B, N, 1), jnp.float32, 0.2, 1.0)

    ref = varifocal_loss_ref(pred_score, gt_score, label)

    # Default config (single large tile).
    out_default = varifocal_loss_pallas(pred_score, gt_score, label)
    # Small tile -> multi-step accumulation along the reduction grid axis.
    out_tiled = varifocal_loss_pallas(pred_score, gt_score, label, tm=64)
    # Forced 2-"core" leading grid axis (per-core partial outputs).
    out_2core = varifocal_loss_pallas(pred_score, gt_score, label, num_cores=2)

    # Ragged shape: element count not a multiple of 128 -> lane padding,
    # in-kernel row mask, and clamped out-of-range block on the second core.
    Br, Nr, Cr = 2, 7, 33
    pred_r = jax.random.normal(k4, (Br, Nr, Cr), jnp.float32) * 2.0
    label_r = jax.nn.one_hot(jax.random.randint(k5, (Br, Nr), 0, Cr), Cr,
                             dtype=jnp.float32)
    gt_r = label_r * 0.7
    ref_r = varifocal_loss_ref(pred_r, gt_r, label_r)
    out_ragged = varifocal_loss_pallas(pred_r, gt_r, label_r, num_cores=2)

    jax.block_until_ready((out_default, out_tiled, out_2core, out_ragged))

    for got, want in ((out_default, ref), (out_tiled, ref), (out_2core, ref),
                      (out_ragged, ref_r)):
        assert jnp.allclose(got, want, rtol=2e-3, atol=1e-3), (got, want)
    print("KERNEL_OK")
</pallas_src>

<mosaic_0001>
module attributes {stable_mosaic.version = 11 : i64} {
  func.func @_vfl_kernel(%arg0: i32, %arg1: i32, %arg2: memref<256x128xf32, #tpu.memory_space<vmem>>, %arg3: memref<256x128xf32, #tpu.memory_space<vmem>>, %arg4: memref<256x128xf32, #tpu.memory_space<vmem>>, %arg5: memref<1x1x128xf32, #tpu.memory_space<vmem>>, %arg6: memref<1x128xf32, #tpu.memory_space<vmem>>) attributes {dimension_semantics = [#tpu.dimension_semantics<arbitrary>, #tpu.dimension_semantics<arbitrary>], iteration_bounds = array<i64: 1, 1>, scalar_prefetch = 0 : i64, scratch_operands = 1 : i64, tpu.core_type = #tpu.core_type<tc>, window_params = [{transform_indices = @transform_0, window_bounds = array<i64: 256, 128>}, {transform_indices = @transform_1, window_bounds = array<i64: 256, 128>}, {transform_indices = @transform_2, window_bounds = array<i64: 256, 128>}, {transform_indices = @transform_3, window_bounds = array<i64: 1, 1, 128>}]} {
    %c0_i32 = arith.constant 0 : i32
    %0 = arith.cmpi eq, %arg1, %c0_i32 : i32
    %1 = arith.extui %0 : i1 to i32
    %c0_i32_0 = arith.constant 0 : i32
    %2 = arith.cmpi ne, %1, %c0_i32_0 : i32
    scf.if %2 {
      %cst_18 = arith.constant 0.000000e+00 : f32
      %40 = vector.broadcast %cst_18 : f32 to vector<1x128xf32>
      %c0_19 = arith.constant 0 : index
      %c0_20 = arith.constant 0 : index
      %41 = vector.load %arg6[%c0_19, %c0_20] : memref<1x128xf32, #tpu.memory_space<vmem>>, vector<1x128xf32>
      tpu.vector_store %arg6[%c0_19, %c0_20], %40 {strides = array<i32>} : memref<1x128xf32, #tpu.memory_space<vmem>>, vector<1x128xf32>,
    } else {
    }
    %c0 = arith.constant 0 : index
    %c0_1 = arith.constant 0 : index
    %3 = vector.load %arg2[%c0, %c0_1] : memref<256x128xf32, #tpu.memory_space<vmem>>, vector<256x128xf32>
    %c0_2 = arith.constant 0 : index
    %c0_3 = arith.constant 0 : index
    %4 = vector.load %arg3[%c0_2, %c0_3] : memref<256x128xf32, #tpu.memory_space<vmem>>, vector<256x128xf32>
    %c0_4 = arith.constant 0 : index
    %c0_5 = arith.constant 0 : index
    %5 = vector.load %arg4[%c0_4, %c0_5] : memref<256x128xf32, #tpu.memory_space<vmem>>, vector<256x128xf32>
    %6 = math.absf %3 : vector<256x128xf32>
    %cst = arith.constant 0.000000e+00 : f32
    %7 = vector.broadcast %cst : f32 to vector<256x128xf32>
    %8 = arith.subf %7, %6 : vector<256x128xf32>
    %9 = math.exp %8 : vector<256x128xf32>
    %cst_6 = arith.constant 1.000000e+00 : f32
    %10 = vector.broadcast %cst_6 : f32 to vector<256x128xf32>
    %11 = arith.addf %10, %9 : vector<256x128xf32>
    %12 = tpu.reciprocal %11 {approx = true} : vector<256x128xf32> -> vector<256x128xf32>
    %cst_7 = arith.constant 0.000000e+00 : f32
    %13 = vector.broadcast %cst_7 : f32 to vector<256x128xf32>
    %14 = arith.cmpf oge, %3, %13 : vector<256x128xf32>
    %15 = arith.mulf %9, %12 : vector<256x128xf32>
    %16 = arith.select %14, %12, %15 : vector<256x128xi1>, vector<256x128xf32>
    %17 = arith.mulf %16, %16 : vector<256x128xf32>
    %cst_8 = arith.constant 7.500000e-01 : f32
    %18 = vector.broadcast %cst_8 : f32 to vector<256x128xf32>
    %19 = arith.mulf %18, %17 : vector<256x128xf32>
    %cst_9 = arith.constant 1.000000e+00 : f32
    %20 = vector.broadcast %cst_9 : f32 to vector<256x128xf32>
    %21 = arith.subf %20, %5 : vector<256x128xf32>
    %22 = arith.mulf %19, %21 : vector<256x128xf32>
    %23 = arith.mulf %4, %5 : vector<256x128xf32>
    %24 = arith.addf %22, %23 : vector<256x128xf32>
    %cst_10 = arith.constant 0.000000e+00 : f32
    %25 = vector.broadcast %cst_10 : f32 to vector<256x128xf32>
    %26 = arith.maximumf %3, %25 : vector<256x128xf32>
    %27 = arith.mulf %3, %4 : vector<256x128xf32>
    %28 = arith.subf %26, %27 : vector<256x128xf32>
    %29 = math.log %11 : vector<256x128xf32>
    %30 = arith.addf %28, %29 : vector<256x128xf32>
    %c0_11 = arith.constant 0 : index
    %c0_12 = arith.constant 0 : index
    %31 = vector.load %arg6[%c0_11, %c0_12] : memref<1x128xf32, #tpu.memory_space<vmem>>, vector<1x128xf32>
    %32 = arith.mulf %30, %24 : vector<256x128xf32>
    %cst_13 = arith.constant dense<0.000000e+00> : vector<128xf32>
    %33 = vector.multi_reduction <add>, %32, %cst_13 [0] : vector<256x128xf32> to vector<128xf32>
    %34 = vector.shape_cast %33 : vector<128xf32> to vector<1x128xf32>
    %35 = arith.addf %31, %34 : vector<1x128xf32>
    %c0_14 = arith.constant 0 : index
    %c0_15 = arith.constant 0 : index
    %36 = vector.load %arg6[%c0_14, %c0_15] : memref<1x128xf32, #tpu.memory_space<vmem>>, vector<1x128xf32>
    tpu.vector_store %arg6[%c0_14, %c0_15], %35 {strides = array<i32>} : memref<1x128xf32, #tpu.memory_space<vmem>>, vector<1x128xf32>,
    %c0_i32_16 = arith.constant 0 : i32
    %37 = arith.cmpi eq, %arg1, %c0_i32_16 : i32
    %38 = arith.extui %37 : i1 to i32
    %c0_i32_17 = arith.constant 0 : i32
    %39 = arith.cmpi ne, %38, %c0_i32_17 : i32
    scf.if %39 {
      %c0_18 = arith.constant 0 : index
      %c0_19 = arith.constant 0 : index
      %40 = vector.load %arg6[%c0_18, %c0_19] : memref<1x128xf32, #tpu.memory_space<vmem>>, vector<1x128xf32>
      %41 = vector.shape_cast %40 : vector<1x128xf32> to vector<1x1x128xf32>
      %c0_20 = arith.constant 0 : index
      %c0_21 = arith.constant 0 : index
      %c0_22 = arith.constant 0 : index
      %42 = vector.load %arg5[%c0_20, %c0_21, %c0_22] : memref<1x1x128xf32, #tpu.memory_space<vmem>>, vector<1x1x128xf32>
      tpu.vector_store %arg5[%c0_20, %c0_21, %c0_22], %41 {strides = array<i32>} : memref<1x1x128xf32, #tpu.memory_space<vmem>>, vector<1x1x128xf32>,
    } else {
    }
    return
  }
  func.func @transform_0(%arg0: i32, %arg1: i32) -> (i32, i32) {
    %c1_i32 = arith.constant 1 : i32
    %0 = arith.muli %arg0, %c1_i32 : i32
    %1 = arith.addi %0, %arg1 : i32
    %c0_i32 = arith.constant 0 : i32
    %c0_i32_0 = arith.constant 0 : i32
    return %1, %c0_i32 : i32, i32
  }
  func.func @transform_1(%arg0: i32, %arg1: i32) -> (i32, i32) {
    %c1_i32 = arith.constant 1 : i32
    %0 = arith.muli %arg0, %c1_i32 : i32
    %1 = arith.addi %0, %arg1 : i32
    %c0_i32 = arith.constant 0 : i32
    %c0_i32_0 = arith.constant 0 : i32
    return %1, %c0_i32 : i32, i32
  }
  func.func @transform_2(%arg0: i32, %arg1: i32) -> (i32, i32) {
    %c1_i32 = arith.constant 1 : i32
    %0 = arith.muli %arg0, %c1_i32 : i32
    %1 = arith.addi %0, %arg1 : i32
    %c0_i32 = arith.constant 0 : i32
    %c0_i32_0 = arith.constant 0 : i32
    return %1, %c0_i32 : i32, i32
  }
  func.func @transform_3(%arg0: i32, %arg1: i32) -> (i32, i32, i32) {
    %c0_i32 = arith.constant 0 : i32
    %c0_i32_0 = arith.constant 0 : i32
    %c0_i32_1 = arith.constant 0 : i32
    return %arg0, %c0_i32, %c0_i32_0 : i32, i32, i32
  }
}

</mosaic_0001>

<bundles_post_ra>
// kernel: tpu_custom_call.1
= control target key start
LH: loop header
LB: loop body
LE: loop exit
PB: predicated region body
PF: predicated region fallthrough
CT: control target
= control target key end

     0   :  { %8 = vsyncpa [#allocation4], 0  ;;  %s2567_s0 = inlined_call_operand.hbm [shape: f32[256,128], index: 0, kind: input, shape index: {}]   ;;  %s2568_s1 = inlined_call_operand.hbm [shape: f32[256,128], index: 1, kind: input, shape index: {}]   ;;  %s2569_s2 = inlined_call_operand.hbm [shape: f32[256,128], index: 2, kind: input, shape index: {}]   ;;  %s2570_s3 = inlined_call_operand.hbm [shape: f32[1,1,128], index: 3, kind: output, shape index: {}]  }
   0x1   :  { %9 = vsyncpa [#allocation7], 0 }
   0x2   :  { %10 = vsyncpa [#allocation5], 0  ;;  %s1267_s12 = smov [#allocation6]   ;;  %s1268_s14 = smov [#allocation3]  }
   0x3   :  { %s36_s13 = sshll.u32 %s1267_s12, 4  ;;  %s20_s15 = sshll.u32 %s1268_s14, 4  ;;  %s37_s13 = int_to_ptr.vmem [resolvable:$true] %s36_s13  ;;  %s1294_s15 = int_to_ptr.vmem [resolvable:$true] %s20_s15 }
   0x4   :  { %s1173_s18 = scalar_lea.hbm %s2568_s1, 4096 }
   0x5   :  { %p1174_p0 = scmp.ne.s32.totalorder %s2568_s1, %s1173_s18  ;;  %p1177_p1 = scmp.lt.u32.totalorder %s1173_s18, %s2568_s1 }
   0x7   :  { %p1179_p2 = pnand %p1177_p1, %p1174_p0 }
   0x9   :  { %1182 = shalt.err (!%p1179_p2)
}
   0xa   :  { %s1183_s23 = scalar_lea.vmem %s37_s13, 4096  ;;  %p1188_p4 = scmp.lt.s32.totalorder %s37_s13, %s37_s13 }
   0xb   :  { %p1184_p3 = scmp.ne.s32.totalorder %s37_s13, %s1183_s23  ;;  %p1189_p5 = scmp.lt.s32.totalorder %s1183_s23, %s1183_s23 }
   0xd   :  { %p1190_p6 = por %p1189_p5, %p1188_p4 }
   0xf   :  { %p1191_p7 = pnand %p1190_p6, %p1184_p3 }
  0x11   :  { %1194 = shalt.err (!%p1191_p7)
}
  0x12   :  { %s1269_s24 = smov 128   ;;  %s1270_s25 = smov 8  }
  0x13   :  { %42 = dma.hbm_to_vmem [thread:$0]  %s2568_s1, 4096, %s37_s13, [#allocation7], %s1269_s24, %s1269_s24, %s1270_s25  }
  0x14   :  { %s1195_s30 = scalar_lea.hbm %s2567_s0, 4096 }
  0x15   :  { %p1196_p8 = scmp.ne.s32.totalorder %s2567_s0, %s1195_s30  ;;  %p1199_p9 = scmp.lt.u32.totalorder %s1195_s30, %s2567_s0 }
  0x17   :  { %p1201_p10 = pnand %p1199_p9, %p1196_p8 }
  0x19   :  { %1204 = shalt.err (!%p1201_p10)
}
  0x1a   :  { %s1205_s8 = scalar_lea.vmem %s1294_s15, 4096  ;;  %p1210_p12 = scmp.lt.s32.totalorder %s1294_s15, %s1294_s15 }
  0x1b   :  { %p1206_p11 = scmp.ne.s32.totalorder %s1294_s15, %s1205_s8  ;;  %p1211_p13 = scmp.lt.s32.totalorder %s1205_s8, %s1205_s8 }
  0x1d   :  { %p1212_p0 = por %p1211_p13, %p1210_p12 }
  0x1f   :  { %p1213_p1 = pnand %p1212_p0, %p1206_p11 }
  0x21   :  { %1216 = shalt.err (!%p1213_p1)
}
  0x22   :  { %26 = dma.hbm_to_vmem [thread:$0]  %s2567_s0, 4096, %s1294_s15, [#allocation4], %s1269_s24, %s1269_s24, %s1270_s25  }
  0x23   :  { %s1271_s10 = smov [#allocation8]   ;;  %s1217_s14 = scalar_lea.hbm %s2569_s2, 4096 }
  0x24   :  { %s52_s11 = sshll.u32 %s1271_s10, 4  ;;  %p1218_p2 = scmp.ne.s32.totalorder %s2569_s2, %s1217_s14  ;;  %s53_s11 = int_to_ptr.vmem [resolvable:$true] %s52_s11 }
  0x25   :  { %p1221_p3 = scmp.lt.u32.totalorder %s1217_s14, %s2569_s2 }
  0x27   :  { %p1223_p4 = pnand %p1221_p3, %p1218_p2 }
  0x29   :  { %1226 = shalt.err (!%p1223_p4)
}
  0x2a   :  { %s1227_s20 = scalar_lea.vmem %s53_s11, 4096  ;;  %p1232_p6 = scmp.lt.s32.totalorder %s53_s11, %s53_s11 }
  0x2b   :  { %p1228_p5 = scmp.ne.s32.totalorder %s53_s11, %s1227_s20  ;;  %p1233_p7 = scmp.lt.s32.totalorder %s1227_s20, %s1227_s20 }
  0x2d   :  { %p1234_p8 = por %p1233_p7, %p1232_p6 }
  0x2f   :  { %p1235_p9 = pnand %p1234_p8, %p1228_p5 }
  0x31   :  { %1238 = shalt.err (!%p1235_p9)
}
  0x32   :  { %58 = dma.hbm_to_vmem [thread:$0]  %s2569_s2, 4096, %s53_s11, [#allocation7], %s1269_s24, %s1269_s24, %s1270_s25  }
  0x33   :  { %1261 = dma.done.wait [#allocation4], 4096  }
  0x34   :  { %1262 = vsyncadd [#allocation4], 4294963200 }
  0x35   :  { %1263 = dma.done.wait [#allocation7], 8192  }
  0x36   :  { %1264 = vsyncadd [#allocation7], 4294959104  ;;  %v1272_v0 = vmov 0.0   ;;  %v1346_v1 = vld [vmem:[#allocation3] sm:$0xff]  ;;  %v1348_v2 = vld [vmem:[#allocation3 + $0x8] sm:$0xff]  ;;  %s1273_s2 = smov [#allocation9]  }
  0x37   :  { %78 = vst [vmem:[#allocation2] sm:$0x1] %v1272_v0  ;;  %v1350_v3 = vld [vmem:[#allocation3 + $0x10] sm:$0xff]  ;;  %v1352_v4 = vld [vmem:[#allocation3 + $0x18] sm:$0xff]  ;;  %v1354_v5 = vld [vmem:[#allocation3 + $0x20] sm:$0xff]  ;;  %vm367_vm0 = vcmp.ge.f32.partialorder %v1346_v1, 0.0 }
  0x38   :  { %v1356_v6 = vld [vmem:[#allocation3 + $0x28] sm:$0xff]  ;;  %v1358_v7 = vld [vmem:[#allocation3 + $0x30] sm:$0xff]  ;;  %v175_v8 = vand.u32 2147483647, %v1346_v1  ;;  %v1361_v9 = vld [vmem:[#allocation3 + $0x38] sm:$0xff]  ;;  %vm368_vm1 = vcmp.ge.f32.partialorder %v1348_v2, 0.0 }
  0x39   :  { %v1363_v10 = vld [vmem:[#allocation3 + $0x40] sm:$0xff]  ;;  %v1365_v11 = vld [vmem:[#allocation3 + $0x48] sm:$0xff]  ;;  %v176_v12 = vand.u32 2147483647, %v1348_v2  ;;  %v177_v13 = vand.u32 2147483647, %v1350_v3 }
  0x3a   :  { %2709 = vst [vmem:[#allocation13_spill] sm:$0xff] %v1363_v10  ;;  %2710 = vst [vmem:[#allocation14_spill] sm:$0xff] %v1365_v11  ;;  %v178_v14 = vand.u32 2147483647, %v1352_v4  ;;  %v179_v15 = vand.u32 2147483647, %v1354_v5 }
  0x3b   :  { %v1371_v16 = vld [vmem:[#allocation3 + $0x50] sm:$0xff]  ;;  %v180_v17 = vand.u32 2147483647, %v1356_v6  ;;  %v181_v18 = vand.u32 2147483647, %v1358_v7  ;;  %v1375_v19 = vld [vmem:[#allocation3 + $0x58] sm:$0xff] }
  0x3c   :  { %2711 = vst [vmem:[#allocation15_spill] sm:$0xff] %v1371_v16  ;;  %2712 = vst [vmem:[#allocation16_spill] sm:$0xff] %v1375_v19  ;;  %v1377_v20 = vld [vmem:[#allocation3 + $0x60] sm:$0xff]  ;;  %v1379_v21 = vld [vmem:[#allocation3 + $0x68] sm:$0xff]  ;;  %v182_v22 = vand.u32 2147483647, %v1361_v9 }
  0x3d   :  { %2713 = vst [vmem:[#allocation17_spill] sm:$0xff] %v1377_v20  ;;  %2714 = vst [vmem:[#allocation18_spill] sm:$0xff] %v1379_v21  ;;  %v207_v23 = vsub.f32 0.0, %v175_v8  ;;  %v1382_v24 = vld [vmem:[#allocation3 + $0x70] sm:$0xff]  ;;  %v183_v25 = vand.u32 2147483647, %v1363_v10 }
  0x3e   :  { %2715 = vst [vmem:[#allocation19_spill] sm:$0xff] %v1382_v24  ;;  %v184_v26 = vand.u32 2147483647, %v1365_v11  ;;  %v208_v27 = vsub.f32 0.0, %v176_v12  ;;  %v1386_v28 = vld [vmem:[#allocation6] sm:$0xff]  ;;  %v209_v30 = vsub.f32 0.0, %v177_v13 }
  0x3f   :  { %v185_v29 = vand.u32 2147483647, %v1371_v16  ;;  %v210_v31 = vsub.f32 0.0, %v178_v14  ;;  %v1389_v32 = vsub.f32 0.0, %v179_v15  ;;  %v1391_v33 = vld [vmem:[#allocation3 + $0x78] sm:$0xff]  ;;  %v1393_v34 = vld [vmem:[#allocation6 + $0x8] sm:$0xff]  ;;  %v1420_v49 = vmul.f32 %v1386_v28, %v1346_v1 }
  0x40   :  { %2716 = vst [vmem:[#allocation20_spill] sm:$0xff] %v1391_v33  ;;  %v1395_v35 = vld [vmem:[#allocation6 + $0x10] sm:$0xff]  ;;  %v186_v36 = vand.u32 2147483647, %v1375_v19  ;;  %v212_v37 = vsub.f32 0.0, %v180_v17  ;;  %v1398_v38 = vsub.f32 0.0, %v181_v18  ;;  %v1431_v54 = vmul.f32 %v1393_v34, %v1348_v2 }
  0x41   :  { %v1400_v39 = vld [vmem:[#allocation6 + $0x18] sm:$0xff]  ;;  %v1402_v40 = vld [vmem:[#allocation6 + $0x20] sm:$0xff]  ;;  %v1404_v41 = vld [vmem:[#allocation6 + $0x28] sm:$0xff]  ;;  %v187_v42 = vand.u32 2147483647, %v1377_v20  ;;  %v1407_v43 = vsub.f32 0.0, %v182_v22  ;;  %v1435_v55 = vmul.f32 %v1395_v35, %v1350_v3 }
  0x42   :  { %v1409_v44 = vld [vmem:[#allocation6 + $0x30] sm:$0xff]  ;;  %v1411_v45 = vld [vmem:[#allocation6 + $0x38] sm:$0xff]  ;;  %v188_v46 = vand.u32 2147483647, %v1379_v21  ;;  %v1414_v47 = vsub.f32 0.0, %v183_v25  ;;  %v1416_v48 = vsub.f32 0.0, %v184_v26  ;;  %v1447_v60 = vmul.f32 %v1400_v39, %v1352_v4 }
  0x43   :  { %2717 = vst [vmem:[#allocation21_spill] sm:$0xff] %v1420_v49  ;;  %v1422_v50 = vld [vmem:[#allocation3 + $0x80] sm:$0xff]  ;;  %v189_v52 = vand.u32 2147483647, %v1382_v24  ;;  %v1427_v53 = vsub.f32 0.0, %v185_v29  ;;  %2719 = vst [vmem:[#allocation23_spill] sm:$0xff] %v1431_v54  ;;  %v1451_v61 = vmul.f32 %v1402_v40, %v1354_v5  ;;  %v1455_v62 = vmul.f32 %v1404_v41, %v1356_v6 }
  0x44   :  { %2718 = vst [vmem:[#allocation22_spill] sm:$0xff] %v1422_v50  ;;  %v1424_v51 = vld [vmem:[#allocation6 + $0x40] sm:$0xff]  ;;  %2720 = vst [vmem:[#allocation24_spill] sm:$0xff] %v1435_v55  ;;  %v1437_v56 = vld [vmem:[#allocation3 + $0x88] sm:$0xff]  ;;  %v1443_v59 = vsub.f32 0.0, %v186_v36  ;;  %v1464_v13 = vsub.f32 0.0, %v187_v42  ;;  %v1468_v14 = vmul.f32 %v1409_v44, %v1358_v7  ;;  %v1472_v15 = vmul.f32 %v1411_v45, %v1361_v9 }
  0x45   :  { %2721 = vst [vmem:[#allocation25_spill] sm:$0xff] %v1437_v56  ;;  %v1439_v57 = vld [vmem:[#allocation6 + $0x48] sm:$0xff]  ;;  %v1441_v58 = vld [vmem:[#allocation6 + $0x50] sm:$0xff]  ;;  %2722 = vst [vmem:[#allocation26_spill] sm:$0xff] %v1447_v60  ;;  %v190_v12 = vand.u32 2147483647, %v1391_v33  ;;  %v1481_v26 = vmul.f32 %v1424_v51, %v1363_v10 }
  0x46   :  { %2723 = vst [vmem:[#allocation27_spill] sm:$0xff] %v1451_v61  ;;  %2724 = vst [vmem:[#allocation28_spill] sm:$0xff] %v1455_v62  ;;  %v1457_v63 = vld [vmem:[#allocation6 + $0x58] sm:$0xff]  ;;  %v1459_v0 = vld [vmem:[#allocation6 + $0x60] sm:$0xff]  ;;  %v191_v18 = vand.u32 2147483647, %v1422_v50 }
  0x47   :  { %v1461_v8 = vld [vmem:[#allocation6 + $0x68] sm:$0xff]  ;;  %2725 = vst [vmem:[#allocation29_spill] sm:$0xff] %v1468_v14  ;;  %2726 = vst [vmem:[#allocation30_spill] sm:$0xff] %v1472_v15  ;;  %v1474_v17 = vld [vmem:[#allocation6 + $0x70] sm:$0xff]  ;;  %v1477_v22 = vsub.f32 0.0, %v188_v46  ;;  %v1485_v36 = vsub.f32 0.0, %v189_v52  ;;  %v1489_v14 = vmul.f32 %v1439_v57, %v1365_v11  ;;  %v1493_v15 = vmul.f32 %v1441_v58, %v1371_v16 }
  0x48   :  { %v239_v25 = vmul.f32 1.442695, %v207_v23  ;;  %2727 = vst [vmem:[#allocation31_spill] sm:$0xff] %v1481_v26  ;;  %v1483_v29 = vld [vmem:[#allocation3 + $0x90] sm:$0xff]  ;;  %v241_v42 = vmul.f32 1.442695, %v208_v27  ;;  %v1502_v52 = vmul.f32 %v1457_v63, %v1375_v19  ;;  %v1506_v27 = vmul.f32 %v1459_v0, %v1377_v20 }
  0x49   :  { %2728 = vst [vmem:[#allocation32_spill] sm:$0xff] %v1483_v29  ;;  %2729 = vst [vmem:[#allocation33_spill] sm:$0xff] %v1489_v14  ;;  %v1495_v46 = vld [vmem:[#allocation6 + $0x78] sm:$0xff]  ;;  %v1497_v23 = vld [vmem:[#allocation6 + $0x80] sm:$0xff]  ;;  %v192_v62 = vand.u32 2147483647, %v1437_v56  ;;  %v1516_v55 = vmul.f32 %v1461_v8, %v1379_v21 }
  0x4a   :  { %2730 = vst [vmem:[#allocation34_spill] sm:$0xff] %v1493_v15  ;;  %v243_v26 = vmul.f32 1.442695, %v209_v30  ;;  %2731 = vst [vmem:[#allocation35_spill] sm:$0xff] %v1502_v52  ;;  %v1508_v14 = vld [vmem:[#allocation3 + $0x98] sm:$0xff]  ;;  %v1510_v61 = vld [vmem:[#allocation6 + $0x88] sm:$0xff]  ;;  %v1520_v30 = vmul.f32 %v1474_v17, %v1382_v24  ;;  %947 = vpow2.f32 %v239_v25 }
  0x4b   :  { %2732 = vst [vmem:[#allocation36_spill] sm:$0xff] %v1506_v27  ;;  %2733 = vst [vmem:[#allocation37_spill] sm:$0xff] %v1508_v14  ;;  %v1512_v15 = vsub.f32 0.0, %v190_v12  ;;  %v245_v60 = vmul.f32 1.442695, %v210_v31  ;;  %v1522_v52 = vld [vmem:[#allocation6 + $0x90] sm:$0xff]  ;;  %949 = vpow2.f32 %v241_v42  ;;  %v1551_v42 = vmul.f32 %v1510_v61, %v1437_v56 }
  0x4c   :  { %2734 = vst [vmem:[#allocation38_spill] sm:$0xff] %v1516_v55  ;;  %2735 = vst [vmem:[#allocation39_spill] sm:$0xff] %v1520_v30  ;;  %v193_v54 = vand.u32 2147483647, %v1483_v29  ;;  %v1525_v27 = vsub.f32 0.0, %v191_v18  ;;  %v1528_v12 = vld [vmem:[#allocation3 + $0xa0] sm:$0xff]  ;;  %v1534_v55 = vmul.f32 %v1495_v46, %v1391_v33  ;;  %v1538_v30 = vmul.f32 %v1497_v23, %v1422_v50 }
  0x4d   :  { %v247_v49 = vmul.f32 1.442695, %v1389_v32  ;;  %2736 = vst [vmem:[#allocation40_spill] sm:$0xff] %v1528_v12  ;;  %v1530_v31 = vld [vmem:[#allocation6 + $0x98] sm:$0xff]  ;;  %v249_v21 = vmul.f32 1.442695, %v212_v37  ;;  %951 = vpow2.f32 %v243_v26 }
  0x4e   :  { %2737 = vst [vmem:[#allocation41_spill] sm:$0xff] %v1534_v55  ;;  %2738 = vst [vmem:[#allocation42_spill] sm:$0xff] %v1538_v30  ;;  %v1540_v24 = vld [vmem:[#allocation6 + $0xa0] sm:$0xff]  ;;  %v194_v18 = vand.u32 2147483647, %v1508_v14  ;;  %v1543_v25 = vsub.f32 0.0, %v192_v62  ;;  %953 = vpow2.f32 %v245_v60  ;;  %v1555_v30 = vmul.f32 %v1522_v52, %v1483_v29 }
  0x4f   :  { %v251_v32 = vmul.f32 1.442695, %v1398_v38  ;;  %v1546_v20 = vld [vmem:[#allocation3 + $0xa8] sm:$0xff]  ;;  %v253_v37 = vmul.f32 1.442695, %v1407_v43  ;;  %2740 = vst [vmem:[#allocation44_spill] sm:$0xff] %v1551_v42  ;;  %955 = vpow2.f32 %v247_v49  ;;  %v1566_v60 = vmul.f32 %v1530_v31, %v1508_v14 }
  0x50   :  { %2739 = vst [vmem:[#allocation43_spill] sm:$0xff] %v1546_v20  ;;  %2741 = vst [vmem:[#allocation45_spill] sm:$0xff] %v1555_v30  ;;  %v195_v55 = vand.u32 2147483647, %v1528_v12  ;;  %v225_v62 = vsub.f32 0.0, %v193_v54  ;;  %v1559_v38 = vld [vmem:[#allocation3 + $0xb0] sm:$0xff]  ;;  %957 = vpow2.f32 %v249_v21  ;;  %v1570_v30 = vmul.f32 %v1540_v24, %v1528_v12 }
  0x51   :  { %v255_v26 = vmul.f32 1.442695, %v1414_v47  ;;  %2742 = vst [vmem:[#allocation46_spill] sm:$0xff] %v1559_v38  ;;  %v1561_v50 = vld [vmem:[#allocation8] sm:$0xff]  ;;  %v257_v43 = vmul.f32 1.442695, %v1416_v48  ;;  %959 = vpow2.f32 %v251_v32 }
  0x52   :  { %2743 = vst [vmem:[#allocation47_spill] sm:$0xff] %v1561_v50  ;;  %2744 = vst [vmem:[#allocation48_spill] sm:$0xff] %v1566_v60  ;;  %v1572_v42 = vld [vmem:[#allocation8 + $0x8] sm:$0xff]  ;;  %v196_v49 = vand.u32 2147483647, %v1546_v20  ;;  %v226_v47 = vsub.f32 0.0, %v194_v18  ;;  %961 = vpow2.f32 %v253_v37  ;;  %v1583_v60 = vmul.f32 %v1561_v50, %v1386_v28 }
  0x53   :  { %2745 = vst [vmem:[#allocation49_spill] sm:$0xff] %v1570_v30  ;;  %2746 = vst [vmem:[#allocation50_spill] sm:$0xff] %v1572_v42  ;;  %v259_v54 = vmul.f32 1.442695, %v1427_v53  ;;  %v1576_v29 = vld [vmem:[#allocation3 + $0xb8] sm:$0xff]  ;;  %v1578_v21 = vld [vmem:[#allocation8 + $0x10] sm:$0xff]  ;;  %v1587_v30 = vmul.f32 %v1572_v42, %v1393_v34  ;;  %963 = vpow2.f32 %v255_v26 }
  0x54   :  { %2747 = vst [vmem:[#allocation51_spill] sm:$0xff] %v1576_v29  ;;  %2748 = vst [vmem:[#allocation52_spill] sm:$0xff] %v1578_v21  ;;  %v261_v48 = vmul.f32 1.442695, %v1443_v59  ;;  %v1589_v20 = vld [vmem:[#allocation8 + $0x18] sm:$0xff]  ;;  %v227_v53 = vsub.f32 0.0, %v195_v55  ;;  %965 = vpow2.f32 %v257_v43  ;;  %v1602_v34 = vmul.f32 %v1578_v21, %v1395_v35  ;;  %v1608_v55 = vpop.eup %947 }
  0x55   :  { %2749 = vst [vmem:[#allocation53_spill] sm:$0xff] %v1583_v60  ;;  %2750 = vst [vmem:[#allocation54_spill] sm:$0xff] %v1587_v30  ;;  %v197_v18 = vand.u32 2147483647, %v1559_v38  ;;  %v263_v32 = vmul.f32 1.442695, %v1464_v13  ;;  %v1606_v30 = vmul.f32 %v1589_v20, %v1400_v39  ;;  %967 = vpow2.f32 %v259_v54  ;;  %v1614_v38 = vpop.eup %949 }
  0x56   :  { %2751 = vst [vmem:[#allocation55_spill] sm:$0xff] %v1589_v20  ;;  %v1593_v12 = vld [vmem:[#allocation3 + $0xc0] sm:$0xff]  ;;  %v1595_v37 = vld [vmem:[#allocation3 + $0xc8] sm:$0xff]  ;;  %v265_v28 = vmul.f32 1.442695, %v1477_v22  ;;  %2755 = vst [vmem:[#allocation59_spill] sm:$0xff] %v1602_v34  ;;  %969 = vpow2.f32 %v261_v48 }
  0x57   :  { %2752 = vst [vmem:[#allocation56_spill] sm:$0xff] %v1593_v12  ;;  %2753 = vst [vmem:[#allocation57_spill] sm:$0xff] %v1595_v37  ;;  %v1597_v59 = vld [vmem:[#allocation8 + $0x20] sm:$0xff]  ;;  %v1610_v13 = vld [vmem:[#allocation8 + $0x28] sm:$0xff]  ;;  %v198_v26 = vand.u32 2147483647, %v1576_v29  ;;  %971 = vpow2.f32 %v263_v32 }
  0x58   :  { %2754 = vst [vmem:[#allocation58_spill] sm:$0xff] %v1597_v59  ;;  %2756 = vst [vmem:[#allocation60_spill] sm:$0xff] %v1606_v30  ;;  %v228_v60 = vsub.f32 0.0, %v196_v49  ;;  %v267_v43 = vmul.f32 1.442695, %v1485_v36  ;;  %v1616_v22 = vld [vmem:[#allocation3 + $0xd0] sm:$0xff]  ;;  %v1623_v30 = vmul.f32 %v1597_v59, %v1402_v40  ;;  %v1627_v34 = vmul.f32 %v1610_v13, %v1404_v41  ;;  %v1629_v49 = vpop.eup %951 }
  0x59   :  { %2757 = vst [vmem:[#allocation61_spill] sm:$0xff] %v1610_v13  ;;  %2758 = vst [vmem:[#allocation62_spill] sm:$0xff] %v1616_v22  ;;  %v1618_v35 = vld [vmem:[#allocation3 + $0xd8] sm:$0xff]  ;;  %v269_v39 = vmul.f32 1.442695, %v1512_v15  ;;  %v1631_v36 = vld [vmem:[#allocation8 + $0x30] sm:$0xff]  ;;  %v1635_v14 = vpop.eup %953  ;;  %973 = vpow2.f32 %v265_v28 }
  0x5a   :  { %2759 = vst [vmem:[#allocation63_spill] sm:$0xff] %v1618_v35  ;;  %2760 = vst [vmem:[#allocation64_spill] sm:$0xff] %v1623_v30  ;;  %v199_v54 = vand.u32 2147483647, %v1593_v12  ;;  %v229_v29 = vsub.f32 0.0, %v197_v18  ;;  %v1637_v15 = vld [vmem:[#allocation3 + $0xe0] sm:$0xff]  ;;  %v1647_v12 = vpop.eup %955  ;;  %975 = vpow2.f32 %v267_v43 }
  0x5b   :  { %2761 = vst [vmem:[#allocation65_spill] sm:$0xff] %v1627_v34  ;;  %2762 = vst [vmem:[#allocation66_spill] sm:$0xff] %v1631_v36  ;;  %v271_v48 = vmul.f32 1.442695, %v1525_v27  ;;  %v1639_v40 = vld [vmem:[#allocation8 + $0x38] sm:$0xff]  ;;  %v1645_v34 = vmul.f32 %v1631_v36, %v1409_v44  ;;  %v1649_v18 = vld [vmem:[#allocation3 + $0xe8] sm:$0xff]  ;;  %977 = vpow2.f32 %v269_v39 }
  0x5c   :  { %2763 = vst [vmem:[#allocation67_spill] sm:$0xff] %v1637_v15  ;;  %2764 = vst [vmem:[#allocation68_spill] sm:$0xff] %v1639_v40  ;;  %v200_v30 = vand.u32 2147483647, %v1595_v37  ;;  %v273_v41 = vmul.f32 1.442695, %v1543_v25  ;;  %v1654_v56 = vmul.f32 %v1639_v40, %v1411_v45  ;;  %v1656_v37 = vpop.eup %957 }
  0x5d   :  { %2765 = vst [vmem:[#allocation69_spill] sm:$0xff] %v1645_v34  ;;  %2766 = vst [vmem:[#allocation70_spill] sm:$0xff] %v1649_v18  ;;  %v201_v27 = vand.u32 2147483647, %v1616_v22  ;;  %v275_v32 = vmul.f32 1.442695, %v225_v62  ;;  %v1661_v33 = vpop.eup %959  ;;  %979 = vpow2.f32 %v271_v48 }
  0x5e   :  { %2767 = vst [vmem:[#allocation71_spill] sm:$0xff] %v1654_v56  ;;  %2768 = vst [vmem:[#allocation72_spill] sm:$0xff] %v1656_v37  ;;  %v1658_v28 = vld [vmem:[#allocation3 + $0xf0] sm:$0xff]  ;;  %v202_v25 = vand.u32 2147483647, %v1618_v35  ;;  %v230_v44 = vsub.f32 0.0, %v198_v26  ;;  %v1666_v45 = vpop.eup %961  ;;  %981 = vpow2.f32 %v273_v41 }
  0x5f   :  { %2769 = vst [vmem:[#allocation73_spill] sm:$0xff] %v1658_v28  ;;  %v277_v34 = vmul.f32 1.442695, %v226_v47  ;;  %2770 = vst [vmem:[#allocation74_spill] sm:$0xff] %v1661_v33  ;;  %v1663_v19 = vld [vmem:[#allocation3 + $0xf8] sm:$0xff]  ;;  %v231_v62 = vsub.f32 0.0, %v199_v54  ;;  %v1669_v35 = vpop.eup %963  ;;  %983 = vpow2.f32 %v275_v32 }
  0x60   :  { %2771 = vst [vmem:[#allocation75_spill] sm:$0xff] %v1663_v19  ;;  %v203_v43 = vand.u32 2147483647, %v1637_v15  ;;  %v279_v22 = vmul.f32 1.442695, %v227_v53  ;;  %2772 = vst [vmem:[#allocation76_spill] sm:$0xff] %v1666_v45  ;;  %v1672_v10 = vpop.eup %965 }
  0x61   :  { %v204_v56 = vand.u32 2147483647, %v1649_v18  ;;  %v232_v16 = vsub.f32 0.0, %v200_v30  ;;  %v281_v11 = vmul.f32 1.442695, %v228_v60  ;;  %2773 = vst [vmem:[#allocation77_spill] sm:$0xff] %v1669_v35  ;;  %985 = vpow2.f32 %v277_v34  ;;  %v1677_v18 = vpop.eup %967 }
  0x62   :  { %v205_v47 = vand.u32 2147483647, %v1658_v28  ;;  %v233_v26 = vsub.f32 0.0, %v201_v27  ;;  %v283_v39 = vmul.f32 1.442695, %v229_v29  ;;  %2774 = vst [vmem:[#allocation78_spill] sm:$0xff] %v1672_v10  ;;  %987 = vpow2.f32 %v279_v22  ;;  %v1685_v29 = vpop.eup %969 }
  0x63   :  { %v1674_v15 = vld [vmem:[#allocation8 + $0x40] sm:$0xff]  ;;  %v206_v53 = vand.u32 2147483647, %v1663_v19  ;;  %v234_v54 = vsub.f32 0.0, %v202_v25  ;;  %v285_v48 = vmul.f32 1.442695, %v230_v44  ;;  %989 = vpow2.f32 %v281_v11  ;;  %v1693_v44 = vpop.eup %971 }
  0x64   :  { %2775 = vst [vmem:[#allocation79_spill] sm:$0xff] %v1674_v15  ;;  %2776 = vst [vmem:[#allocation80_spill] sm:$0xff] %v1677_v18  ;;  %v1679_v30 = vld [vmem:[#allocation8 + $0x48] sm:$0xff]  ;;  %v235_v60 = vsub.f32 0.0, %v203_v43  ;;  %v287_v41 = vmul.f32 1.442695, %v231_v62  ;;  %v1683_v27 = vmul.f32 %v1674_v15, %v1424_v51  ;;  %991 = vpow2.f32 %v283_v39 }
  0x65   :  { %2777 = vst [vmem:[#allocation81_spill] sm:$0xff] %v1679_v30  ;;  %2779 = vst [vmem:[#allocation83_spill] sm:$0xff] %v1685_v29  ;;  %v1687_v32 = vld [vmem:[#allocation8 + $0x50] sm:$0xff]  ;;  %v236_v28 = vsub.f32 0.0, %v204_v56  ;;  %v289_v25 = vmul.f32 1.442695, %v232_v16  ;;  %v1691_v34 = vmul.f32 %v1679_v30, %v1439_v57  ;;  %993 = vpow2.f32 %v285_v48 }
  0x66   :  { %2778 = vst [vmem:[#allocation82_spill] sm:$0xff] %v1683_v27  ;;  %2780 = vst [vmem:[#allocation84_spill] sm:$0xff] %v1687_v32  ;;  %v1695_v43 = vld [vmem:[#allocation8 + $0x58] sm:$0xff]  ;;  %v237_v22 = vsub.f32 0.0, %v205_v47  ;;  %v291_v62 = vmul.f32 1.442695, %v233_v26  ;;  %v1699_v51 = vmul.f32 %v1687_v32, %v1441_v58  ;;  %v1701_v27 = vpop.eup %973  ;;  %995 = vpow2.f32 %v287_v41 }
  0x67   :  { %2781 = vst [vmem:[#allocation85_spill] sm:$0xff] %v1691_v34  ;;  %2782 = vst [vmem:[#allocation86_spill] sm:$0xff] %v1693_v44  ;;  %v1703_v56 = vld [vmem:[#allocation8 + $0x60] sm:$0xff]  ;;  %v1705_v11 = vld [vmem:[#allocation8 + $0x68] sm:$0xff]  ;;  %v238_v16 = vsub.f32 0.0, %v206_v53  ;;  %v1709_v34 = vmul.f32 %v1695_v43, %v1457_v63  ;;  %v1711_v47 = vpop.eup %975  ;;  %997 = vpow2.f32 %v289_v25  ;;  %v1802_v19 = vadd.f32 1.0, %v1677_v18 }
  0x68   :  { %2783 = vst [vmem:[#allocation87_spill] sm:$0xff] %v1695_v43  ;;  %2784 = vst [vmem:[#allocation88_spill] sm:$0xff] %v1699_v51  ;;  %v293_v57 = vmul.f32 1.442695, %v234_v54  ;;  %v1713_v26 = vld [vmem:[#allocation8 + $0x70] sm:$0xff]  ;;  %v1715_v39 = vld [vmem:[#allocation8 + $0x78] sm:$0xff]  ;;  %v1719_v51 = vmul.f32 %v1703_v56, %v1459_v0  ;;  %v1723_v53 = vmul.f32 %v1705_v11, %v1461_v8  ;;  %v1725_v54 = vpop.eup %977  ;;  %999 = vpow2.f32 %v291_v62 }
  0x69   :  { %2785 = vst [vmem:[#allocation89_spill] sm:$0xff] %v1701_v27  ;;  %2786 = vst [vmem:[#allocation90_spill] sm:$0xff] %v1703_v56  ;;  %v295_v58 = vmul.f32 1.442695, %v235_v60  ;;  %v1727_v63 = vld [vmem:[#allocation8 + $0x80] sm:$0xff]  ;;  %v1729_v48 = vld [vmem:[#allocation8 + $0x88] sm:$0xff]  ;;  %v1733_v41 = vmul.f32 %v1713_v26, %v1474_v17  ;;  %v1737_v0 = vmul.f32 %v1715_v39, %v1495_v46  ;;  %v1739_v60 = vpop.eup %979 }
  0x6a   :  { %2787 = vst [vmem:[#allocation91_spill] sm:$0xff] %v1705_v11  ;;  %2788 = vst [vmem:[#allocation92_spill] sm:$0xff] %v1709_v34  ;;  %v297_v34 = vmul.f32 1.442695, %v236_v28  ;;  %v1741_v8 = vld [vmem:[#allocation8 + $0x90] sm:$0xff]  ;;  %v1747_v25 = vmul.f32 %v1727_v63, %v1497_v23  ;;  %v1751_v17 = vmul.f32 %v1729_v48, %v1510_v61  ;;  %v1753_v28 = vpop.eup %981  ;;  %1001 = vpow2.f32 %v293_v57  ;;  %v1867_v15 = vld [vmem:[#allocation8 + $0xa0] sm:$0xff] }
  0x6b   :  { %2789 = vst [vmem:[#allocation93_spill] sm:$0xff] %v1711_v47  ;;  %2790 = vst [vmem:[#allocation94_spill] sm:$0xff] %v1713_v26  ;;  %v301_v46 = vmul.f32 1.442695, %v238_v16  ;;  %1003 = vpow2.f32 %v295_v58  ;;  %v1766_v23 = vadd.f32 1.0, %v1608_v55  ;;  %v1769_v61 = vadd.f32 1.0, %v1614_v38 }
  0x6c   :  { %2791 = vst [vmem:[#allocation95_spill] sm:$0xff] %v1715_v39  ;;  %2792 = vst [vmem:[#allocation96_spill] sm:$0xff] %v1719_v51  ;;  %v299_v51 = vmul.f32 1.442695, %v237_v22  ;;  %v1763_v22 = vpop.eup %983  ;;  %v1772_v57 = vadd.f32 1.0, %v1629_v49  ;;  %1005 = vpow2.f32 %v297_v34  ;;  %v1783_v58 = vadd.f32 1.0, %v1656_v37 }
  0x6d   :  { %2793 = vst [vmem:[#allocation97_spill] sm:$0xff] %v1723_v53  ;;  %2794 = vst [vmem:[#allocation98_spill] sm:$0xff] %v1727_v63  ;;  %v1743_v53 = vld [vmem:[#allocation8 + $0x98] sm:$0xff]  ;;  %v1774_v16 = vpop.eup %985  ;;  %v1794_v34 = vadd.f32 1.0, %v1669_v35  ;;  %v1813_v35 = vadd.f32 1.0, %v1701_v27  ;;  %v1820_v18 = vadd.f32 1.0, %v1711_v47 }
  0x6e   :  { %2795 = vst [vmem:[#allocation99_spill] sm:$0xff] %v1729_v48  ;;  %2796 = vst [vmem:[#allocation100_spill] sm:$0xff] %v1733_v41  ;;  %v1761_v62 = vmul.f32 %v1743_v53, %v1530_v31  ;;  %v1780_v31 = vadd.f32 1.0, %v1647_v12  ;;  %1007 = vpow2.f32 %v299_v51  ;;  %v1799_v41 = vadd.f32 1.0, %v1672_v10  ;;  %v1889_v37 = vld [vmem:[#allocation8 + $0xb8] sm:$0xff]  ;;  %v1901_v56 = vld [vmem:[#allocation8 + $0xc8] sm:$0xff] }
  0x6f   :  { %2797 = vst [vmem:[#allocation101_spill] sm:$0xff] %v1737_v0  ;;  %2798 = vst [vmem:[#allocation102_spill] sm:$0xff] %v1741_v8  ;;  %v1757_v0 = vmul.f32 %v1741_v8, %v1522_v52  ;;  %v1777_v52 = vadd.f32 1.0, %v1635_v14  ;;  %1009 = vpow2.f32 %v301_v46  ;;  %v1805_v51 = vadd.f32 1.0, %v1685_v29  ;;  %v1879_v46 = vld [vmem:[#allocation8 + $0xb0] sm:$0xff]  ;;  %v1891_v29 = vld [vmem:[#allocation8 + $0xc0] sm:$0xff] }
  0x70   :  { %2799 = vst [vmem:[#allocation103_spill] sm:$0xff] %v1743_v53  ;;  %2800 = vst [vmem:[#allocation104_spill] sm:$0xff] %v1747_v25  ;;  %1011 = vrcp.f32 %v1766_v23  ;;  %v1828_v27 = vadd.f32 1.0, %v1725_v54  ;;  %v1836_v47 = vadd.f32 1.0, %v1739_v60  ;;  %v1844_v42 = vadd.f32 1.0, %v1753_v28  ;;  %v1903_v43 = vld [vmem:[#allocation8 + $0xd0] sm:$0xff] }
  0x71   :  { %2801 = vst [vmem:[#allocation105_spill] sm:$0xff] %v1751_v17  ;;  %2802 = vst [vmem:[#allocation106_spill] sm:$0xff] %v1757_v0  ;;  %v1788_v0 = vadd.f32 1.0, %v1661_v33  ;;  %v1791_v17 = vadd.f32 1.0, %v1666_v45  ;;  %v1810_v45 = vadd.f32 1.0, %v1693_v44  ;;  %1013 = vrcp.f32 %v1769_v61  ;;  %v1914_v30 = vld [vmem:[#allocation8 + $0xd8] sm:$0xff] }
  0x72   :  { %2803 = vst [vmem:[#allocation107_spill] sm:$0xff] %v1761_v62  ;;  %2804 = vst [vmem:[#allocation108_spill] sm:$0xff] %v1766_v23  ;;  %v1785_v62 = vpop.eup %987  ;;  %1015 = vrcp.f32 %v1772_v57  ;;  %v1852_v20 = vadd.f32 1.0, %v1763_v22  ;;  %v1916_v8 = vld [vmem:[#allocation8 + $0xe0] sm:$0xff]  ;;  %v1929_v53 = vld [vmem:[#allocation8 + $0xf0] sm:$0xff]  ;;  %vm369_vm2 = vcmp.ge.f32.partialorder %v1350_v3, 0.0 }
  0x73   :  { %2805 = vst [vmem:[#allocation109_spill] sm:$0xff] %v1769_v61  ;;  %2806 = vst [vmem:[#allocation110_spill] sm:$0xff] %v1772_v57  ;;  %v1796_v25 = vpop.eup %989  ;;  %1017 = vrcp.f32 %v1777_v52  ;;  %v1940_v40 = vld [vmem:[#allocation8 + $0xf8] sm:$0xff]  ;;  %vm370_vm3 = vcmp.ge.f32.partialorder %v1352_v4, 0.0  ;;  %vm371_vm4 = vcmp.ge.f32.partialorder %v1354_v5, 0.0  ;;  %vm372_vm5 = vcmp.ge.f32.partialorder %v1356_v6, 0.0 }
  0x74   :  { %2807 = vst [vmem:[#allocation111_spill] sm:$0xff] %v1777_v52  ;;  %2808 = vst [vmem:[#allocation112_spill] sm:$0xff] %v1780_v31  ;;  %v1807_v33 = vpop.eup %991  ;;  %1019 = vrcp.f32 %v1780_v31  ;;  %v1860_v52 = vadd.f32 1.0, %v1774_v16  ;;  %v1882_v50 = vadd.f32 1.0, %v1796_v25  ;;  %vm373_vm6 = vcmp.ge.f32.partialorder %v1358_v7, 0.0  ;;  %v2890_v6 = vld [vmem:[#allocation40_spill] sm:$0xff] }
  0x75   :  { %2809 = vst [vmem:[#allocation113_spill] sm:$0xff] %v1783_v58  ;;  %2810 = vst [vmem:[#allocation114_spill] sm:$0xff] %v1788_v0  ;;  %v1817_v10 = vpop.eup %993  ;;  %1021 = vrcp.f32 %v1783_v58  ;;  %v1870_v58 = vadd.f32 1.0, %v1785_v62  ;;  %v1894_v26 = vadd.f32 1.0, %v1807_v33  ;;  %vm374_vm7 = vcmp.ge.f32.partialorder %v1361_v9, 0.0  ;;  %v2899_v9 = vld [vmem:[#allocation51_spill] sm:$0xff] }
  0x76   :  { %2811 = vst [vmem:[#allocation115_spill] sm:$0xff] %v1791_v17  ;;  %2812 = vst [vmem:[#allocation116_spill] sm:$0xff] %v1794_v34  ;;  %v1825_v44 = vpop.eup %995  ;;  %1023 = vrcp.f32 %v1788_v0  ;;  %v1877_v0 = vld [vmem:[#allocation8 + $0xa8] sm:$0xff]  ;;  %v1906_v63 = vadd.f32 1.0, %v1817_v10  ;;  %s930_s21 = sshll.u32 %s1273_s2, 4  ;;  %s931_s21 = int_to_ptr.vmem [resolvable:$true] %s930_s21 }
  0x77   :  { %2813 = vst [vmem:[#allocation117_spill] sm:$0xff] %v1799_v41  ;;  %2814 = vst [vmem:[#allocation118_spill] sm:$0xff] %v1802_v19  ;;  %v1833_v23 = vpop.eup %997  ;;  %1025 = vrcp.f32 %v1791_v17  ;;  %v1919_v48 = vadd.f32 1.0, %v1825_v44  ;;  %s1239_s22 = scalar_lea.vmem %s931_s21, 16  ;;  %s1243_s23 = scalar_lea.vmem %s931_s21, 32 }
  0x78   :  { %2815 = vst [vmem:[#allocation119_spill] sm:$0xff] %v1805_v51  ;;  %2816 = vst [vmem:[#allocation120_spill] sm:$0xff] %v1810_v45  ;;  %v1841_v21 = vpop.eup %999  ;;  %1027 = vrcp.f32 %v1794_v34  ;;  %v1932_v13 = vadd.f32 1.0, %v1833_v23  ;;  %p1240_p10 = scmp.ne.s32.totalorder %s931_s21, %s1239_s22  ;;  %p1244_p11 = scmp.lt.s32.totalorder %s931_s21, %s931_s21 }
  0x79   :  { %2817 = vst [vmem:[#allocation121_spill] sm:$0xff] %v1813_v35  ;;  %2818 = vst [vmem:[#allocation122_spill] sm:$0xff] %v1817_v10  ;;  %v1849_v59 = vpop.eup %1001  ;;  %1029 = vrcp.f32 %v1799_v41  ;;  %v1927_v41 = vld [vmem:[#allocation8 + $0xe8] sm:$0xff]  ;;  %v1943_v61 = vadd.f32 1.0, %v1841_v21  ;;  %p1245_p12 = scmp.lt.s32.totalorder %s1243_s23, %s1239_s22 }
  0x7a   :  { %2819 = vst [vmem:[#allocation123_spill] sm:$0xff] %v1820_v18  ;;  %2820 = vst [vmem:[#allocation124_spill] sm:$0xff] %v1825_v44  ;;  %v1857_v36 = vpop.eup %1003  ;;  %1031 = vrcp.f32 %v1802_v19  ;;  %v1953_v57 = vadd.f32 1.0, %v1849_v59 }
  0x7b   :  { %2821 = vst [vmem:[#allocation125_spill] sm:$0xff] %v1828_v27  ;;  %2822 = vst [vmem:[#allocation126_spill] sm:$0xff] %v1833_v23  ;;  %v1865_v31 = vpop.eup %1005  ;;  %1033 = vrcp.f32 %v1805_v51  ;;  %v1962_v10 = vadd.f32 1.0, %v1857_v36  ;;  %p1246_p13 = por %p1245_p12, %p1244_p11 }
  0x7c   :  { %2823 = vst [vmem:[#allocation127_spill] sm:$0xff] %v1836_v47  ;;  %2824 = vst [vmem:[#allocation128_spill] sm:$0xff] %v1841_v21  ;;  %v1875_v32 = vpop.eup %1007  ;;  %1035 = vrcp.f32 %v1810_v45  ;;  %v1972_v21 = vld [vmem:[#allocation6 + $0xb0] sm:$0xff]  ;;  %v1985_v45 = vld [vmem:[#allocation6 + $0xb8] sm:$0xff] }
  0x7d   :  { %2825 = vst [vmem:[#allocation129_spill] sm:$0xff] %v1844_v42  ;;  %2826 = vst [vmem:[#allocation130_spill] sm:$0xff] %v1849_v59  ;;  %v1887_v17 = vpop.eup %1009  ;;  %1037 = vrcp.f32 %v1813_v35  ;;  %v1970_v59 = vld [vmem:[#allocation6 + $0xa8] sm:$0xff]  ;;  %v1975_v35 = vadd.f32 1.0, %v1865_v31  ;;  %p1247_p0 = pnand %p1246_p13, %p1240_p10 }
  0x7e   :  { %2827 = vst [vmem:[#allocation131_spill] sm:$0xff] %v1852_v20  ;;  %2828 = vst [vmem:[#allocation132_spill] sm:$0xff] %v1857_v36  ;;  %v1899_v34 = vpop.eup %1011  ;;  %1039 = vrcp.f32 %v1820_v18  ;;  %v1996_v36 = vmul.f32 %v1879_v46, %v1972_v21 }
  0x7f   :  { %2829 = vst [vmem:[#allocation133_spill] sm:$0xff] %v1860_v52  ;;  %2830 = vst [vmem:[#allocation134_spill] sm:$0xff] %v1865_v31  ;;  %v1912_v11 = vpop.eup %1013  ;;  %1041 = vrcp.f32 %v1828_v27  ;;  %v1981_v27 = vmul.f32 %v1867_v15, %v1540_v24  ;;  %v1992_v31 = vmul.f32 %v1877_v0, %v1970_v59  ;;  %v2000_v24 = vld [vmem:[#allocation6 + $0xc0] sm:$0xff] }
  0x80   :  { %2831 = vst [vmem:[#allocation135_spill] sm:$0xff] %v1867_v15  ;;  %2832 = vst [vmem:[#allocation136_spill] sm:$0xff] %v1870_v58  ;;  %v1925_v39 = vpop.eup %1015  ;;  %1043 = vrcp.f32 %v1836_v47  ;;  %v2867_v47 = vld [vmem:[#allocation14_spill] sm:$0xff] }
  0x81   :  { %2833 = vst [vmem:[#allocation137_spill] sm:$0xff] %v1877_v0  ;;  %2834 = vst [vmem:[#allocation138_spill] sm:$0xff] %v1879_v46  ;;  %v1938_v19 = vpop.eup %1017  ;;  %1045 = vrcp.f32 %v1844_v42  ;;  %v2864_v42 = vld [vmem:[#allocation13_spill] sm:$0xff]  ;;  %vm376_vm9 = vcmp.ge.f32.partialorder %v2867_v47, 0.0  ;;  %v2872_v46 = vld [vmem:[#allocation72_spill] sm:$0xff] }
  0x82   :  { %2835 = vst [vmem:[#allocation139_spill] sm:$0xff] %v1882_v50  ;;  %2836 = vst [vmem:[#allocation140_spill] sm:$0xff] %v1889_v37  ;;  %v1950_v51 = vpop.eup %1019  ;;  %1047 = vrcp.f32 %v1852_v20  ;;  %vm375_vm8 = vcmp.ge.f32.partialorder %v2864_v42, 0.0  ;;  %v401_v20 = vmul.f32 %v1925_v39, %v1629_v49  ;;  %v2876_v0 = vld [vmem:[#allocation17_spill] sm:$0xff]  ;;  %v2877_v15 = vld [vmem:[#allocation74_spill] sm:$0xff] }
  0x83   :  { %2837 = vst [vmem:[#allocation141_spill] sm:$0xff] %v1891_v29  ;;  %2838 = vst [vmem:[#allocation142_spill] sm:$0xff] %v1894_v26  ;;  %v1959_v44 = vpop.eup %1021  ;;  %1049 = vrcp.f32 %v1860_v52  ;;  %v402_v52 = vmul.f32 %v1938_v19, %v1635_v14  ;;  %vm379_vm12 = vcmp.ge.f32.partialorder %v2876_v0, 0.0  ;;  %v2902_v47 = vld [vmem:[#allocation62_spill] sm:$0xff]  ;;  %v2904_v0 = vld [vmem:[#allocation67_spill] sm:$0xff] }
  0x84   :  { %2839 = vst [vmem:[#allocation143_spill] sm:$0xff] %v1901_v56  ;;  %2840 = vst [vmem:[#allocation144_spill] sm:$0xff] %v1903_v43  ;;  %v1968_v18 = vpop.eup %1023  ;;  %1051 = vrcp.f32 %v1870_v58  ;;  %v2871_v58 = vld [vmem:[#allocation16_spill] sm:$0xff]  ;;  %v404_v14 = vmul.f32 %v1959_v44, %v2872_v46 }
  0x85   :  { %2841 = vst [vmem:[#allocation145_spill] sm:$0xff] %v1906_v63  ;;  %2842 = vst [vmem:[#allocation146_spill] sm:$0xff] %v1914_v30  ;;  %v1983_v23 = vpop.eup %1025  ;;  %1053 = vrcp.f32 %v1882_v50  ;;  %vm378_vm11 = vcmp.ge.f32.partialorder %v2871_v58, 0.0  ;;  %v2062_v50 = vld [vmem:[#allocation6 + $0xe8] sm:$0xff]  ;;  %v405_v46 = vmul.f32 %v1968_v18, %v2877_v15  ;;  %v433_v15 = vsel %vm369_vm2, %v1925_v39, %v401_v20 }
  0x86   :  { %2843 = vst [vmem:[#allocation147_spill] sm:$0xff] %v1916_v8  ;;  %2844 = vst [vmem:[#allocation148_spill] sm:$0xff] %v1919_v48  ;;  %1055 = vrcp.f32 %v1894_v26  ;;  %v434_v3 = vsel %vm370_vm3, %v1938_v19, %v402_v52  ;;  %v436_v4 = vsel %vm372_vm5, %v1959_v44, %v404_v14  ;;  %v2889_v52 = vld [vmem:[#allocation77_spill] sm:$0xff]  ;;  %v2891_v44 = vld [vmem:[#allocation78_spill] sm:$0xff] }
  0x87   :  { %2845 = vst [vmem:[#allocation149_spill] sm:$0xff] %v1927_v41  ;;  %2846 = vst [vmem:[#allocation150_spill] sm:$0xff] %v1929_v53  ;;  %v399_v53 = vmul.f32 %v1899_v34, %v1608_v55  ;;  %v400_v55 = vmul.f32 %v1912_v11, %v1614_v38  ;;  %v2026_v38 = vmul.f32 %v1891_v29, %v2000_v24  ;;  %v2870_v29 = vld [vmem:[#allocation15_spill] sm:$0xff]  ;;  %1057 = vrcp.f32 %v1906_v63 }
  0x88   :  { %2847 = vst [vmem:[#allocation151_spill] sm:$0xff] %v1932_v13  ;;  %2848 = vst [vmem:[#allocation152_spill] sm:$0xff] %v1940_v40  ;;  %v1998_v40 = vpop.eup %1027  ;;  %vm377_vm10 = vcmp.ge.f32.partialorder %v2870_v29, 0.0  ;;  %1059 = vrcp.f32 %v1919_v48  ;;  %v2894_v26 = vld [vmem:[#allocation43_spill] sm:$0xff] }
  0x89   :  { %2849 = vst [vmem:[#allocation153_spill] sm:$0xff] %v1943_v61  ;;  %2850 = vst [vmem:[#allocation154_spill] sm:$0xff] %v1953_v57  ;;  %v432_v1 = vsel %vm368_vm1, %v1912_v11, %v400_v55  ;;  %v2089_v11 = vmul.f32 %v1927_v41, %v2062_v50  ;;  %vm388_vm5 = vcmp.ge.f32.partialorder %v2894_v26, 0.0  ;;  %v2903_v29 = vld [vmem:[#allocation63_spill] sm:$0xff] }
  0x8a   :  { %2851 = vst [vmem:[#allocation155_spill] sm:$0xff] %v1962_v10  ;;  %2852 = vst [vmem:[#allocation156_spill] sm:$0xff] %v1970_v59  ;;  %v2011_v59 = vmul.f32 %v1889_v37, %v1985_v45  ;;  %v403_v37 = vmul.f32 %v1950_v51, %v1647_v12  ;;  %v431_v12 = vsel %vm367_vm0, %v1899_v34, %v399_v53 }
  0x8b   :  { %2853 = vst [vmem:[#allocation157_spill] sm:$0xff] %v1972_v21  ;;  %2854 = vst [vmem:[#allocation158_spill] sm:$0xff] %v1975_v35  ;;  %v2013_v21 = vpop.eup %1029  ;;  %v2102_v39 = vmul.f32 %v431_v12, %v431_v12  ;;  %1061 = vrcp.f32 %v1932_v13  ;;  %v2114_v19 = vmul.f32 %v432_v1, %v432_v1  ;;  %v437_v12 = vsel %vm373_vm6, %v1968_v18, %v405_v46  ;;  %v2893_v18 = vld [vmem:[#allocation83_spill] sm:$0xff] }
  0x8c   :  { %2855 = vst [vmem:[#allocation159_spill] sm:$0xff] %v1981_v27  ;;  %2856 = vst [vmem:[#allocation160_spill] sm:$0xff] %v1985_v45  ;;  %v2003_v27 = vadd.f32 1.0, %v1875_v32  ;;  %v2028_v45 = vpop.eup %1031  ;;  %v435_v20 = vsel %vm371_vm4, %v1950_v51, %v403_v37  ;;  %1063 = vrcp.f32 %v1943_v61  ;;  %v2888_v37 = vld [vmem:[#allocation37_spill] sm:$0xff]  ;;  %v407_v51 = vmul.f32 %v1998_v40, %v2889_v52  ;;  %v2892_v52 = vld [vmem:[#allocation80_spill] sm:$0xff] }
  0x8d   :  { %2857 = vst [vmem:[#allocation161_spill] sm:$0xff] %v1992_v31  ;;  %2858 = vst [vmem:[#allocation162_spill] sm:$0xff] %v1996_v36  ;;  %v2015_v36 = vld [vmem:[#allocation6 + $0xc8] sm:$0xff]  ;;  %v2018_v31 = vadd.f32 1.0, %v1887_v17  ;;  %vm386_vm3 = vcmp.ge.f32.partialorder %v2888_v37, 0.0  ;;  %v2123_v13 = vmul.f32 %v433_v15, %v433_v15  ;;  %vm387_vm4 = vcmp.ge.f32.partialorder %v2890_v6, 0.0 }
  0x8e   :  { %2859 = vst [vmem:[#allocation163_spill] sm:$0xff] %v2000_v24  ;;  %2860 = vst [vmem:[#allocation164_spill] sm:$0xff] %v2003_v27  ;;  %v2040_v49 = vmul.f32 %v1901_v56, %v2015_v36  ;;  %v2042_v24 = vpop.eup %1033  ;;  %v2060_v56 = vld [vmem:[#allocation6 + $0xe0] sm:$0xff]  ;;  %1065 = vrcp.f32 %v1953_v57  ;;  %v408_v14 = vmul.f32 %v2013_v21, %v2891_v44  ;;  %v2129_v1 = vmul.f32 %v434_v3, %v434_v3  ;;  %v2895_v3 = vld [vmem:[#allocation86_spill] sm:$0xff] }
  0x8f   :  { %2861 = vst [vmem:[#allocation165_spill] sm:$0xff] %v2011_v59  ;;  %2862 = vst [vmem:[#allocation166_spill] sm:$0xff] %v2015_v36  ;;  %v2030_v59 = vld [vmem:[#allocation6 + $0xd0] sm:$0xff]  ;;  %v2058_v36 = vpop.eup %1035  ;;  %v2085_v2 = vmul.f32 %v1916_v8, %v2060_v56  ;;  %v2131_v61 = vmul.f32 %v435_v20, %v435_v20  ;;  %1067 = vrcp.f32 %v1962_v10  ;;  %v409_v7 = vmul.f32 %v2028_v45, %v2892_v52 }
  0x90   :  { %2863 = vst [vmem:[#allocation167_spill] sm:$0xff] %v2018_v31  ;;  %2865 = vst [vmem:[#allocation13_spill] sm:$0xff] %v2026_v38  ;;  %v2044_v38 = vld [vmem:[#allocation6 + $0xd8] sm:$0xff]  ;;  %v2075_v34 = vpop.eup %1037  ;;  %v410_v46 = vmul.f32 %v2042_v24, %v2893_v18  ;;  %v2138_v15 = vmul.f32 %v436_v4, %v436_v4  ;;  %1069 = vrcp.f32 %v1975_v35  ;;  %v411_v20 = vmul.f32 %v2058_v36, %v2895_v3  ;;  %v2896_v18 = vld [vmem:[#allocation46_spill] sm:$0xff] }
  0x91   :  { %2866 = vst [vmem:[#allocation168_spill] sm:$0xff] %v2030_v59  ;;  %2868 = vst [vmem:[#allocation14_spill] sm:$0xff] %v2040_v49  ;;  %v2056_v49 = vmul.f32 %v1903_v43, %v2030_v59  ;;  %v2073_v53 = vmul.f32 %v1914_v30, %v2044_v38  ;;  %v2880_v59 = vld [vmem:[#allocation19_spill] sm:$0xff]  ;;  %v2091_v55 = vpop.eup %1039  ;;  %v2147_v10 = vmul.f32 %v437_v12, %v437_v12  ;;  %1071 = vrcp.f32 %v2003_v27  ;;  %v2897_v4 = vld [vmem:[#allocation89_spill] sm:$0xff] }
  0x92   :  { %2869 = vst [vmem:[#allocation169_spill] sm:$0xff] %v2044_v38  ;;  %2874 = vst [vmem:[#allocation16_spill] sm:$0xff] %v2060_v56  ;;  %vm381_vm14 = vcmp.ge.f32.partialorder %v2880_v59, 0.0  ;;  %v2884_v38 = vld [vmem:[#allocation22_spill] sm:$0xff]  ;;  %v2887_v56 = vld [vmem:[#allocation76_spill] sm:$0xff]  ;;  %v412_v41 = vmul.f32 %v2075_v34, %v2897_v4  ;;  %v439_v3 = vsel %vm375_vm8, %v1998_v40, %v407_v51  ;;  %v440_v12 = vsel %vm376_vm9, %v2013_v21, %v408_v14 }
  0x93   :  { %2873 = vst [vmem:[#allocation15_spill] sm:$0xff] %v2056_v49  ;;  %2875 = vst [vmem:[#allocation72_spill] sm:$0xff] %v2062_v50  ;;  %v2879_v49 = vld [vmem:[#allocation18_spill] sm:$0xff]  ;;  %vm383_vm0 = vcmp.ge.f32.partialorder %v2884_v38, 0.0  ;;  %v2886_v50 = vld [vmem:[#allocation32_spill] sm:$0xff]  ;;  %v406_v48 = vmul.f32 %v1983_v23, %v2887_v56  ;;  %v441_v51 = vsel %vm377_vm10, %v2028_v45, %v409_v7  ;;  %vm393_vm9 = vcmp.ge.f32.partialorder %v2902_v47, 0.0 }
  0x94   :  { %2878 = vst [vmem:[#allocation17_spill] sm:$0xff] %v2073_v53  ;;  %vm380_vm13 = vcmp.ge.f32.partialorder %v2879_v49, 0.0  ;;  %2881 = vst [vmem:[#allocation74_spill] sm:$0xff] %v2085_v2  ;;  %v2883_v53 = vld [vmem:[#allocation20_spill] sm:$0xff]  ;;  %v2104_v2 = vpop.eup %1041  ;;  %vm385_vm2 = vcmp.ge.f32.partialorder %v2886_v50, 0.0  ;;  %v2898_v35 = vld [vmem:[#allocation93_spill] sm:$0xff]  ;;  %1073 = vrcp.f32 %v2018_v31  ;;  %v2183_v14 = vmul.f32 %v439_v3, %v439_v3 }
  0x95   :  { %2882 = vst [vmem:[#allocation18_spill] sm:$0xff] %v2089_v11  ;;  %vm382_vm15 = vcmp.ge.f32.partialorder %v2883_v53, 0.0  ;;  %v2885_v11 = vld [vmem:[#allocation25_spill] sm:$0xff]  ;;  %v1044_v5 = vpop.eup %1043  ;;  %v438_v44 = vsel %vm374_vm7, %v1983_v23, %v406_v48  ;;  %v413_v8 = vmul.f32 %v2091_v55, %v2898_v35  ;;  %vm390_vm7 = vcmp.ge.f32.partialorder %v2899_v9, 0.0  ;;  %v2900_v35 = vld [vmem:[#allocation56_spill] sm:$0xff]  ;;  %v2907_v3 = vld [vmem:[#allocation75_spill] sm:$0xff] }
  0x96   :  { %vm384_vm1 = vcmp.ge.f32.partialorder %v2885_v11, 0.0  ;;  %v1046_v56 = vpop.eup %1045  ;;  %v414_v48 = vmul.f32 %v2104_v2, %v1725_v54  ;;  %v415_v23 = vmul.f32 %v1044_v5, %v1739_v60  ;;  %vm391_vm6 = vcmp.ge.f32.partialorder %v2900_v35, 0.0  ;;  %v2901_v31 = vld [vmem:[#allocation57_spill] sm:$0xff]  ;;  %v2915_v27 = vld [vmem:[#allocation134_spill] sm:$0xff] }
  0x97   :  { %v1048_v63 = vpop.eup %1047  ;;  %v416_v42 = vmul.f32 %v1046_v56, %v1753_v28  ;;  %v442_v54 = vsel %vm378_vm11, %v2042_v24, %v410_v46  ;;  %vm392_vm8 = vcmp.ge.f32.partialorder %v2901_v31, 0.0  ;;  %v443_v28 = vsel %vm379_vm12, %v2058_v36, %v411_v20  ;;  %v2905_v46 = vld [vmem:[#allocation70_spill] sm:$0xff] }
  0x98   :  { %v1050_v57 = vpop.eup %1049  ;;  %v417_v40 = vmul.f32 %v1048_v63, %v1763_v22  ;;  %v2181_v22 = vmul.f32 %v438_v44, %v438_v44  ;;  %vm394_vm10 = vcmp.ge.f32.partialorder %v2903_v29, 0.0  ;;  %v444_v24 = vsel %vm380_vm13, %v2075_v34, %v412_v41 }
  0x99   :  { %v1052_v52 = vpop.eup %1051  ;;  %v418_v21 = vmul.f32 %v1050_v57, %v1774_v16  ;;  %v445_v16 = vsel %vm381_vm14, %v2091_v55, %v413_v8  ;;  %v2193_v7 = vmul.f32 %v440_v12, %v440_v12  ;;  %vm395_vm11 = vcmp.ge.f32.partialorder %v2904_v0, 0.0  ;;  %v2906_v8 = vld [vmem:[#allocation73_spill] sm:$0xff] }
  0x9a   :  { %v1054_v30 = vpop.eup %1053  ;;  %v419_v58 = vmul.f32 %v1052_v52, %v1785_v62  ;;  %vm396_vm12 = vcmp.ge.f32.partialorder %v2905_v46, 0.0  ;;  %v446_v20 = vsel %vm382_vm15, %v2104_v2, %v414_v48  ;;  %v447_v62 = vsel %vm383_vm0, %v1044_v5, %v415_v23 }
  0x9b   :  { %v1056_v4 = vpop.eup %1055  ;;  %v2202_v49 = vmul.f32 %v441_v51, %v441_v51  ;;  %v2204_v41 = vmul.f32 %v442_v54, %v442_v54  ;;  %vm397_vm13 = vcmp.ge.f32.partialorder %v2906_v8, 0.0  ;;  %v420_v34 = vmul.f32 %v1054_v30, %v1796_v25  ;;  %v2908_v51 = vld [vmem:[#allocation122_spill] sm:$0xff] }
  0x9c   :  { %v1058_v60 = vpop.eup %1057  ;;  %v448_v55 = vsel %vm384_vm1, %v1046_v56, %v416_v42  ;;  %v449_v44 = vsel %vm385_vm2, %v1048_v63, %v417_v40  ;;  %v475_v53 = vmul.f32 %v443_v28, %v443_v28  ;;  %vm398_vm14 = vcmp.ge.f32.partialorder %v2907_v3, 0.0  ;;  %v2909_v42 = vld [vmem:[#allocation124_spill] sm:$0xff] }
  0x9d   :  { %v1060_v45 = vpop.eup %1059  ;;  %v421_v38 = vmul.f32 %v1056_v4, %v1807_v33  ;;  %v450_v5 = vsel %vm386_vm3, %v1050_v57, %v418_v21  ;;  %v476_v48 = vmul.f32 %v444_v24, %v444_v24  ;;  %v477_v23 = vmul.f32 %v445_v16, %v445_v16  ;;  %v2910_v57 = vld [vmem:[#allocation126_spill] sm:$0xff]  ;;  %v2911_v24 = vld [vmem:[#allocation128_spill] sm:$0xff] }
  0x9e   :  { %v1062_v36 = vpop.eup %1061  ;;  %v422_v25 = vmul.f32 %v1058_v60, %v2908_v51  ;;  %v451_v11 = vsel %vm387_vm4, %v1052_v52, %v419_v58  ;;  %v478_v56 = vmul.f32 %v446_v20, %v446_v20  ;;  %v479_v50 = vmul.f32 %v447_v62, %v447_v62  ;;  %v2912_v58 = vld [vmem:[#allocation130_spill] sm:$0xff] }
  0x9f   :  { %v1064_v59 = vpop.eup %1063  ;;  %v423_v40 = vmul.f32 %v1060_v45, %v2909_v42  ;;  %v480_v54 = vmul.f32 %v448_v55, %v448_v55  ;;  %v481_v28 = vmul.f32 %v449_v44, %v449_v44  ;;  %v2221_v33 = vmul.f32 0.75, %v2102_v39  ;;  %v2914_v39 = vld [vmem:[#allocation132_spill] sm:$0xff] }
  0xa0   :  { %v1066_v2 = vpop.eup %1065  ;;  %v424_v21 = vmul.f32 %v1062_v36, %v2910_v57  ;;  %v425_v16 = vmul.f32 %v1064_v59, %v2911_v24  ;;  %v452_v51 = vsel %vm388_vm5, %v1054_v30, %v420_v34  ;;  %v482_v6 = vmul.f32 %v450_v5, %v450_v5 }
  0xa1   :  { %v1068_v12 = vpop.eup %1067  ;;  %v426_v20 = vmul.f32 %v1066_v2, %v2912_v58  ;;  %vm2913_vm15 = vcmp.ge.f32.partialorder %v2896_v18, 0.0  ;;  %v483_v55 = vmul.f32 %v451_v11, %v451_v11  ;;  %v496_v44 = vmul.f32 0.75, %v2114_v19 }
  0xa2   :  { %v1070_v63 = vpop.eup %1069  ;;  %v453_v62 = vsel %vm2913_vm15, %v1056_v4, %v421_v38  ;;  %v427_v42 = vmul.f32 %v1068_v12, %v2914_v39  ;;  %v454_v57 = vsel %vm390_vm7, %v1058_v60, %v422_v25  ;;  %v497_v26 = vmul.f32 0.75, %v2123_v13 }
  0xa3   :  { %v1072_v37 = vpop.eup %1071  ;;  %v428_v43 = vmul.f32 %v1070_v63, %v2915_v27  ;;  %v455_v34 = vsel %vm391_vm6, %v1060_v45, %v423_v40  ;;  %v484_v5 = vmul.f32 %v452_v51, %v452_v51  ;;  %v498_v18 = vmul.f32 0.75, %v2129_v1 }
  0xa4   :  { %v1074_v52 = vpop.eup %1073  ;;  %v429_v30 = vmul.f32 %v1072_v37, %v1875_v32  ;;  %v456_v19 = vsel %vm392_vm8, %v1062_v36, %v424_v21  ;;  %v457_v27 = vsel %vm393_vm9, %v1064_v59, %v425_v16  ;;  %v485_v9 = vmul.f32 %v453_v62, %v453_v62  ;;  %v2921_v62 = vld [vmem:[#allocation50_spill] sm:$0xff] }
  0xa5   :  { %v430_v4 = vmul.f32 %v1074_v52, %v1887_v17  ;;  %v458_v13 = vsel %vm394_vm10, %v1066_v2, %v426_v20  ;;  %v486_v60 = vmul.f32 %v454_v57, %v454_v57  ;;  %v499_v32 = vmul.f32 0.75, %v2131_v61 }
  0xa6   :  { %v500_v35 = vmul.f32 0.75, %v2138_v15  ;;  %v459_v1 = vsel %vm395_vm11, %v1068_v12, %v427_v42  ;;  %v460_v17 = vsel %vm396_vm12, %v1070_v63, %v428_v43  ;;  %v487_v31 = vmul.f32 %v455_v34, %v455_v34  ;;  %v2923_v42 = vld [vmem:[#allocation52_spill] sm:$0xff]  ;;  %v2925_v34 = vld [vmem:[#allocation55_spill] sm:$0xff] }
  0xa7   :  { %v501_v45 = vmul.f32 0.75, %v2147_v10  ;;  %v461_v47 = vsel %vm397_vm13, %v1072_v37, %v429_v30  ;;  %v488_v36 = vmul.f32 %v456_v19, %v456_v19  ;;  %v489_v29 = vmul.f32 %v457_v27, %v457_v27  ;;  %v2927_v19 = vld [vmem:[#allocation58_spill] sm:$0xff] }
  0xa8   :  { %v502_v59 = vmul.f32 0.75, %v2181_v22  ;;  %v462_v61 = vsel %vm398_vm14, %v1074_v52, %v430_v4  ;;  %v490_v15 = vmul.f32 %v458_v13, %v458_v13  ;;  %v503_v0 = vmul.f32 0.75, %v2183_v14  ;;  %v2916_v14 = vld [vmem:[#allocation108_spill] sm:$0xff]  ;;  %v2917_v52 = vld [vmem:[#allocation109_spill] sm:$0xff] }
  0xa9   :  { %v504_v2 = vmul.f32 0.75, %v2193_v7  ;;  %v491_v46 = vmul.f32 %v459_v1, %v459_v1  ;;  %v492_v43 = vmul.f32 %v460_v17, %v460_v17  ;;  %v505_v38 = vmul.f32 0.75, %v2202_v49  ;;  %v2929_v13 = vld [vmem:[#allocation61_spill] sm:$0xff]  ;;  %v2931_v17 = vld [vmem:[#allocation111_spill] sm:$0xff] }
  0xaa   :  { %v506_v10 = vmul.f32 0.75, %v2204_v41  ;;  %v493_v8 = vmul.f32 %v461_v47, %v461_v47  ;;  %v507_v12 = vmul.f32 0.75, %v475_v53  ;;  %v508_v25 = vmul.f32 0.75, %v476_v48 }
  0xab   :  { %v509_v11 = vmul.f32 0.75, %v477_v23  ;;  %v494_v63 = vmul.f32 %v462_v61, %v462_v61  ;;  %v510_v22 = vmul.f32 0.75, %v478_v56  ;;  %v511_v40 = vmul.f32 0.75, %v479_v50  ;;  %v2918_v56 = vld [vmem:[#allocation110_spill] sm:$0xff] }
  0xac   :  { %v512_v3 = vmul.f32 0.75, %v480_v54  ;;  %v513_v37 = vmul.f32 0.75, %v481_v28  ;;  %v514_v21 = vmul.f32 0.75, %v482_v6  ;;  %v515_v24 = vmul.f32 0.75, %v483_v55  ;;  %v2919_v54 = vld [vmem:[#allocation47_spill] sm:$0xff] }
  0xad   :  { %1075 = vlog2.f32 %v2916_v14  ;;  %v516_v7 = vmul.f32 0.75, %v484_v5  ;;  %v517_v16 = vmul.f32 0.75, %v485_v9  ;;  %v518_v51 = vmul.f32 0.75, %v486_v60 }
  0xae   :  { %1077 = vlog2.f32 %v2917_v52  ;;  %v519_v49 = vmul.f32 0.75, %v487_v31  ;;  %v520_v41 = vmul.f32 0.75, %v488_v36  ;;  %v521_v58 = vmul.f32 0.75, %v489_v29  ;;  %v2932_v31 = vld [vmem:[#allocation66_spill] sm:$0xff]  ;;  %v2934_v36 = vld [vmem:[#allocation68_spill] sm:$0xff] }
  0xaf   :  { %v522_v53 = vmul.f32 0.75, %v490_v15  ;;  %v523_v48 = vmul.f32 0.75, %v491_v46  ;;  %v524_v23 = vmul.f32 0.75, %v492_v43  ;;  %v2265_v20 = vmul.f32 0.75, %v493_v8  ;;  %v2940_v43 = vld [vmem:[#allocation84_spill] sm:$0xff]  ;;  %v2944_v52 = vld [vmem:[#allocation90_spill] sm:$0xff] }
  0xb0   :  { %1079 = vlog2.f32 %v2918_v56  ;;  %v2268_v50 = vmul.f32 0.75, %v494_v63  ;;  %v2920_v28 = vsub.f32 1.0, %v2919_v54  ;;  %v2922_v55 = vsub.f32 1.0, %v2921_v62  ;;  %v2942_v63 = vld [vmem:[#allocation87_spill] sm:$0xff]  ;;  %v2946_v54 = vld [vmem:[#allocation112_spill] sm:$0xff] }
  0xb1   :  { %v2924_v57 = vsub.f32 1.0, %v2923_v42  ;;  %v2926_v5 = vsub.f32 1.0, %v2925_v34  ;;  %v2928_v27 = vsub.f32 1.0, %v2927_v19  ;;  %v2930_v60 = vsub.f32 1.0, %v2929_v13 }
  0xb2   :  { %v559_v6 = vmul.f32 %v2920_v28, %v2221_v33  ;;  %v560_v39 = vmul.f32 %v2922_v55, %v496_v44  ;;  %1081 = vlog2.f32 %v2931_v17  ;;  %v2933_v47 = vsub.f32 1.0, %v2932_v31  ;;  %v2959_v31 = vld [vmem:[#allocation103_spill] sm:$0xff] }
  0xb3   :  { %v561_v30 = vmul.f32 %v2924_v57, %v497_v26  ;;  %v562_v4 = vmul.f32 %v2926_v5, %v498_v18  ;;  %v563_v9 = vmul.f32 %v2928_v27, %v499_v32  ;;  %v564_v1 = vmul.f32 %v2930_v60, %v500_v35  ;;  %v2936_v26 = vld [vmem:[#allocation79_spill] sm:$0xff]  ;;  %v2938_v18 = vld [vmem:[#allocation81_spill] sm:$0xff]  ;;  %v2957_v60 = vld [vmem:[#allocation102_spill] sm:$0xff] }
  0xb4   :  { %v2286_v33 = vmul.f32 %v2933_v47, %v501_v45  ;;  %v2935_v44 = vsub.f32 1.0, %v2934_v36  ;;  %v2937_v61 = vsub.f32 1.0, %v2936_v26  ;;  %v2939_v46 = vsub.f32 1.0, %v2938_v18  ;;  %v2961_v36 = vld [vmem:[#allocation113_spill] sm:$0xff] }
  0xb5   :  { %v2941_v35 = vsub.f32 1.0, %v2940_v43  ;;  %v2943_v14 = vsub.f32 1.0, %v2942_v63  ;;  %v2945_v56 = vsub.f32 1.0, %v2944_v52  ;;  %1083 = vlog2.f32 %v2946_v54 }
  0xb6   :  { %v2290_v29 = vmul.f32 %v2935_v44, %v502_v59  ;;  %v2294_v15 = vmul.f32 %v2937_v61, %v503_v0  ;;  %v2298_v32 = vmul.f32 %v2939_v46, %v504_v2  ;;  %v2947_v0 = vld [vmem:[#allocation91_spill] sm:$0xff]  ;;  %v2949_v2 = vld [vmem:[#allocation94_spill] sm:$0xff]  ;;  %v2958_v17 = vsub.f32 1.0, %v2957_v60 }
  0xb7   :  { %v2302_v8 = vmul.f32 %v2941_v35, %v505_v38  ;;  %v2306_v45 = vmul.f32 %v2943_v14, %v506_v10  ;;  %v2310_v59 = vmul.f32 %v2945_v56, %v507_v12  ;;  %v2948_v28 = vsub.f32 1.0, %v2947_v0  ;;  %v2951_v38 = vld [vmem:[#allocation95_spill] sm:$0xff]  ;;  %v2953_v10 = vld [vmem:[#allocation98_spill] sm:$0xff]  ;;  %v2968_v56 = vld [vmem:[#allocation140_spill] sm:$0xff] }
  0xb8   :  { %v2950_v55 = vsub.f32 1.0, %v2949_v2  ;;  %v2952_v57 = vsub.f32 1.0, %v2951_v38  ;;  %v2954_v5 = vsub.f32 1.0, %v2953_v10  ;;  %v2955_v12 = vld [vmem:[#allocation99_spill] sm:$0xff]  ;;  %v2960_v47 = vsub.f32 1.0, %v2959_v31  ;;  %v1140_v35 = vld [vmem:[#allocation3 + $0x8] sm:$0xff] }
  0xb9   :  { %v2315_v62 = vmul.f32 %v2948_v28, %v508_v25  ;;  %v2956_v27 = vsub.f32 1.0, %v2955_v12  ;;  %v2335_v25 = vmul.f32 %v2958_v17, %v513_v37  ;;  %1085 = vlog2.f32 %v2961_v36  ;;  %v2962_v44 = vld [vmem:[#allocation135_spill] sm:$0xff]  ;;  %v2966_v14 = vld [vmem:[#allocation138_spill] sm:$0xff]  ;;  %v2970_v28 = vld [vmem:[#allocation141_spill] sm:$0xff] }
  0xba   :  { %v2319_v42 = vmul.f32 %v2950_v55, %v509_v11  ;;  %v2323_v34 = vmul.f32 %v2952_v57, %v510_v22  ;;  %v2327_v19 = vmul.f32 %v2954_v5, %v511_v40  ;;  %v2339_v11 = vmul.f32 %v2960_v47, %v514_v21  ;;  %v1076_v22 = vpop.eup %1075  ;;  %v2964_v40 = vld [vmem:[#allocation137_spill] sm:$0xff]  ;;  %v2972_v55 = vld [vmem:[#allocation114_spill] sm:$0xff]  ;;  %v2975_v10 = vld [vmem:[#allocation144_spill] sm:$0xff] }
  0xbb   :  { %v2331_v13 = vmul.f32 %v2956_v27, %v512_v3  ;;  %v2963_v26 = vsub.f32 1.0, %v2962_v44  ;;  %v2965_v18 = vsub.f32 1.0, %v2964_v40  ;;  %v1139_v3 = vld [vmem:[#allocation3] sm:$0xff]  ;;  %v656_v37 = vmax.f32 %v1140_v35, 0.0  ;;  %v1078_v63 = vpop.eup %1077  ;;  %v2979_v47 = vld [vmem:[#allocation147_spill] sm:$0xff] }
  0xbc   :  { %v655_v43 = vmax.f32 %v1139_v3, 0.0  ;;  %v2967_v52 = vsub.f32 1.0, %v2966_v14  ;;  %v2969_v54 = vsub.f32 1.0, %v2968_v56  ;;  %1087 = vlog2.f32 %v2972_v55  ;;  %v1080_v31 = vpop.eup %1079  ;;  %v2981_v44 = vld [vmem:[#allocation149_spill] sm:$0xff]  ;;  %v2983_v3 = vld [vmem:[#allocation115_spill] sm:$0xff]  ;;  %v2987_v55 = vld [vmem:[#allocation54_spill] sm:$0xff] }
  0xbd   :  { %v2344_v61 = vmul.f32 %v2963_v26, %v515_v24  ;;  %v2348_v46 = vmul.f32 %v2965_v18, %v516_v7  ;;  %v2971_v24 = vsub.f32 1.0, %v2970_v28  ;;  %v2973_v7 = vld [vmem:[#allocation143_spill] sm:$0xff]  ;;  %v2976_v5 = vsub.f32 1.0, %v2975_v10  ;;  %v2986_v28 = vld [vmem:[#allocation53_spill] sm:$0xff]  ;;  %v2989_v10 = vld [vmem:[#allocation116_spill] sm:$0xff] }
  0xbe   :  { %v2352_v21 = vmul.f32 %v2967_v52, %v517_v16  ;;  %v2356_v0 = vmul.f32 %v2969_v54, %v518_v51  ;;  %v2974_v38 = vsub.f32 1.0, %v2973_v7  ;;  %v2977_v16 = vld [vmem:[#allocation146_spill] sm:$0xff]  ;;  %v2982_v26 = vsub.f32 1.0, %v2981_v44  ;;  %v2985_v14 = vld [vmem:[#allocation23_spill] sm:$0xff]  ;;  %v1082_v54 = vpop.eup %1081 }
  0xbf   :  { %v2360_v2 = vmul.f32 %v2971_v24, %v519_v49  ;;  %v2369_v12 = vmul.f32 %v2976_v5, %v521_v58  ;;  %v2978_v27 = vsub.f32 1.0, %v2977_v16  ;;  %v1141_v51 = vld [vmem:[#allocation3 + $0x10] sm:$0xff]  ;;  %v2980_v49 = vsub.f32 1.0, %v2979_v47  ;;  %v2984_v58 = vld [vmem:[#allocation21_spill] sm:$0xff] }
  0xc0   :  { %v2365_v57 = vmul.f32 %v2974_v38, %v520_v41  ;;  %v657_v17 = vmax.f32 %v1141_v51, 0.0  ;;  %v2381_v40 = vmul.f32 %v2982_v26, %v524_v23  ;;  %v1142_v41 = vld [vmem:[#allocation3 + $0x18] sm:$0xff]  ;;  %1089 = vlog2.f32 %v2983_v3  ;;  %v1143_v16 = vld [vmem:[#allocation3 + $0x20] sm:$0xff] }
  0xc1   :  { %v2373_v60 = vmul.f32 %v2978_v27, %v522_v53  ;;  %v2377_v36 = vmul.f32 %v2980_v49, %v523_v48  ;;  %v658_v18 = vmax.f32 %v1142_v41, 0.0  ;;  %v719_v35 = vsub.f32 %v655_v43, %v2984_v58  ;;  %v2988_v7 = vld [vmem:[#allocation59_spill] sm:$0xff]  ;;  %v2990_v23 = vld [vmem:[#allocation60_spill] sm:$0xff]  ;;  %v1084_v49 = vpop.eup %1083 }
  0xc2   :  { %v720_v53 = vsub.f32 %v656_v37, %v2985_v14  ;;  %v752_v52 = vmul.f32 0.6931472, %v1076_v22  ;;  %v754_v56 = vmul.f32 0.6931472, %v1078_v63  ;;  %v623_v24 = vadd.f32 %v2986_v28, %v559_v6  ;;  %v2991_v51 = vld [vmem:[#allocation24_spill] sm:$0xff]  ;;  %v2993_v63 = vld [vmem:[#allocation65_spill] sm:$0xff] }
  0xc3   :  { %v624_v48 = vadd.f32 %v2987_v55, %v560_v39  ;;  %v625_v38 = vadd.f32 %v2988_v7, %v561_v30  ;;  %1091 = vlog2.f32 %v2989_v10  ;;  %v626_v5 = vadd.f32 %v2990_v23, %v562_v4  ;;  %v2992_v37 = vld [vmem:[#allocation64_spill] sm:$0xff]  ;;  %v1144_v6 = vld [vmem:[#allocation3 + $0x28] sm:$0xff]  ;;  %v1086_v14 = vpop.eup %1085  ;;  %v1145_v10 = vld [vmem:[#allocation3 + $0x30] sm:$0xff] }
  0xc4   :  { %v659_v27 = vmax.f32 %v1143_v16, 0.0  ;;  %v721_v47 = vsub.f32 %v657_v17, %v2991_v51  ;;  %v756_v43 = vmul.f32 0.6931472, %v1080_v31  ;;  %v627_v22 = vadd.f32 %v2992_v37, %v563_v9  ;;  %v2994_v39 = vld [vmem:[#allocation117_spill] sm:$0xff]  ;;  %v2995_v30 = vld [vmem:[#allocation26_spill] sm:$0xff]  ;;  %v2997_v31 = vld [vmem:[#allocation71_spill] sm:$0xff] }
  0xc5   :  { %v2394_v44 = vadd.f32 %v2993_v63, %v564_v1  ;;  %v660_v26 = vmax.f32 %v1144_v6, 0.0  ;;  %1093 = vlog2.f32 %v2994_v39  ;;  %v722_v41 = vsub.f32 %v658_v18, %v2995_v30  ;;  %v2996_v28 = vld [vmem:[#allocation69_spill] sm:$0xff]  ;;  %v2998_v1 = vld [vmem:[#allocation82_spill] sm:$0xff]  ;;  %v1146_v16 = vld [vmem:[#allocation3 + $0x38] sm:$0xff] }
  0xc6   :  { %v758_v3 = vmul.f32 0.6931472, %v1082_v54  ;;  %v815_v58 = vadd.f32 %v752_v52, %v719_v35  ;;  %v816_v4 = vadd.f32 %v754_v56, %v720_v53  ;;  %v2400_v17 = vadd.f32 %v2996_v28, %v2286_v33  ;;  %v2999_v7 = vld [vmem:[#allocation118_spill] sm:$0xff]  ;;  %v3000_v54 = vld [vmem:[#allocation27_spill] sm:$0xff]  ;;  %v1088_v56 = vpop.eup %1087  ;;  %v3001_v33 = vld [vmem:[#allocation85_spill] sm:$0xff] }
  0xc7   :  { %v2404_v9 = vadd.f32 %v2997_v31, %v2290_v29  ;;  %v2408_v55 = vadd.f32 %v2998_v1, %v2294_v15  ;;  %1095 = vlog2.f32 %v2999_v7  ;;  %v661_v18 = vmax.f32 %v1145_v10, 0.0  ;;  %v3002_v51 = vld [vmem:[#allocation28_spill] sm:$0xff]  ;;  %v3003_v63 = vld [vmem:[#allocation119_spill] sm:$0xff] }
  0xc8   :  { %v723_v35 = vsub.f32 %v659_v27, %v3000_v54  ;;  %v760_v53 = vmul.f32 0.6931472, %v1084_v49  ;;  %v817_v52 = vadd.f32 %v756_v43, %v721_v47  ;;  %v2414_v23 = vadd.f32 %v3001_v33, %v2298_v32  ;;  %v3004_v27 = vld [vmem:[#allocation88_spill] sm:$0xff] }
  0xc9   :  { %v662_v29 = vmax.f32 %v1146_v16, 0.0  ;;  %v724_v37 = vsub.f32 %v660_v26, %v3002_v51  ;;  %1097 = vlog2.f32 %v3003_v63  ;;  %v762_v15 = vmul.f32 0.6931472, %v1086_v14  ;;  %v3005_v47 = vld [vmem:[#allocation92_spill] sm:$0xff]  ;;  %v3007_v26 = vld [vmem:[#allocation29_spill] sm:$0xff] }
  0xca   :  { %v818_v6 = vadd.f32 %v758_v3, %v722_v41  ;;  %v848_v39 = vmul.f32 %v815_v58, %v623_v24  ;;  %v849_v30 = vmul.f32 %v816_v4, %v624_v48  ;;  %v1090_v28 = vpop.eup %1089  ;;  %v2420_v49 = vadd.f32 %v3004_v27, %v2302_v8  ;;  %v1147_v32 = vld [vmem:[#allocation3 + $0x40] sm:$0xff]  ;;  %v1148_v8 = vld [vmem:[#allocation3 + $0x48] sm:$0xff] }
  0xcb   :  { %v2424_v43 = vadd.f32 %v3005_v47, %v2306_v45  ;;  %v663_v31 = vmax.f32 %v1147_v32, 0.0  ;;  %v3006_v1 = vld [vmem:[#allocation120_spill] sm:$0xff]  ;;  %v725_v7 = vsub.f32 %v661_v18, %v3007_v26  ;;  %v764_v10 = vmul.f32 0.6931472, %v1088_v56  ;;  %v3009_v4 = vld [vmem:[#allocation30_spill] sm:$0xff]  ;;  %v3010_v45 = vld [vmem:[#allocation121_spill] sm:$0xff] }
  0xcc   :  { %1099 = vlog2.f32 %v3006_v1  ;;  %v819_v14 = vadd.f32 %v760_v53, %v723_v35  ;;  %v850_v41 = vmul.f32 %v817_v52, %v625_v38  ;;  %v3008_v48 = vld [vmem:[#allocation96_spill] sm:$0xff]  ;;  %v664_v58 = vmax.f32 %v1148_v8, 0.0  ;;  %v3011_v18 = vld [vmem:[#allocation97_spill] sm:$0xff]  ;;  %v1149_v38 = vld [vmem:[#allocation3 + $0x50] sm:$0xff] }
  0xcd   :  { %v1092_v24 = vpop.eup %1091  ;;  %v2430_v3 = vadd.f32 %v3008_v48, %v2310_v59  ;;  %v726_v54 = vsub.f32 %v662_v29, %v3009_v4  ;;  %1101 = vlog2.f32 %v3010_v45  ;;  %v766_v33 = vmul.f32 0.6931472, %v1090_v28  ;;  %v3012_v52 = vld [vmem:[#allocation31_spill] sm:$0xff] }
  0xce   :  { %v820_v16 = vadd.f32 %v762_v15, %v724_v37  ;;  %v851_v51 = vmul.f32 %v818_v6, %v626_v5  ;;  %v880_v63 = vadd.f32 %v849_v30, %v848_v39  ;;  %v2436_v35 = vadd.f32 %v3011_v18, %v2315_v62  ;;  %v3013_v56 = vld [vmem:[#allocation123_spill] sm:$0xff]  ;;  %v3014_v37 = vld [vmem:[#allocation100_spill] sm:$0xff]  ;;  %v3015_v39 = vld [vmem:[#allocation33_spill] sm:$0xff] }
  0xcf   :  { %v1094_v27 = vpop.eup %1093  ;;  %v665_v53 = vmax.f32 %v1149_v38, 0.0  ;;  %v727_v59 = vsub.f32 %v663_v31, %v3012_v52  ;;  %1103 = vlog2.f32 %v3013_v56  ;;  %v768_v47 = vmul.f32 0.6931472, %v1092_v24  ;;  %v1150_v15 = vld [vmem:[#allocation3 + $0x58] sm:$0xff]  ;;  %v3016_v30 = vld [vmem:[#allocation125_spill] sm:$0xff] }
  0xd0   :  { %v821_v32 = vadd.f32 %v764_v10, %v725_v7  ;;  %v852_v29 = vmul.f32 %v819_v14, %v627_v22  ;;  %v881_v1 = vadd.f32 %v880_v63, %v850_v41  ;;  %v2442_v5 = vadd.f32 %v3014_v37, %v2319_v42  ;;  %v3017_v22 = vld [vmem:[#allocation101_spill] sm:$0xff]  ;;  %v3018_v42 = vld [vmem:[#allocation34_spill] sm:$0xff]  ;;  %v3019_v4 = vld [vmem:[#allocation127_spill] sm:$0xff] }
  0xd1   :  { %v1096_v26 = vpop.eup %1095  ;;  %v666_v6 = vmax.f32 %v1150_v15, 0.0  ;;  %v728_v62 = vsub.f32 %v664_v58, %v3015_v39  ;;  %1105 = vlog2.f32 %v3016_v30  ;;  %v770_v28 = vmul.f32 0.6931472, %v1094_v27  ;;  %v1151_v10 = vld [vmem:[#allocation3 + $0x60] sm:$0xff]  ;;  %v3025_v37 = vld [vmem:[#allocation131_spill] sm:$0xff] }
  0xd2   :  { %v822_v48 = vadd.f32 %v766_v33, %v726_v54  ;;  %v853_v31 = vmul.f32 %v820_v16, %v2394_v44  ;;  %v882_v8 = vadd.f32 %v881_v1, %v851_v51  ;;  %v2449_v7 = vadd.f32 %v3017_v22, %v2323_v34  ;;  %v3020_v44 = vld [vmem:[#allocation104_spill] sm:$0xff]  ;;  %v1152_v16 = vld [vmem:[#allocation3 + $0x68] sm:$0xff]  ;;  %v3021_v34 = vld [vmem:[#allocation35_spill] sm:$0xff] }
  0xd3   :  { %v1098_v24 = vpop.eup %1097  ;;  %v667_v14 = vmax.f32 %v1151_v10, 0.0  ;;  %v729_v41 = vsub.f32 %v665_v53, %v3018_v42  ;;  %1107 = vlog2.f32 %v3019_v4  ;;  %v772_v45 = vmul.f32 0.6931472, %v1096_v26  ;;  %v3022_v38 = vld [vmem:[#allocation129_spill] sm:$0xff] }
  0xd4   :  { %v823_v58 = vadd.f32 %v768_v47, %v727_v59  ;;  %v854_v63 = vmul.f32 %v821_v32, %v2400_v17  ;;  %v883_v27 = vadd.f32 %v882_v8, %v852_v29  ;;  %v2456_v33 = vadd.f32 %v3020_v44, %v2327_v19  ;;  %v3023_v17 = vld [vmem:[#allocation105_spill] sm:$0xff]  ;;  %v1153_v32 = vld [vmem:[#allocation3 + $0x70] sm:$0xff]  ;;  %v3024_v19 = vld [vmem:[#allocation36_spill] sm:$0xff] }
  0xd5   :  { %v668_v51 = vmax.f32 %v1152_v16, 0.0  ;;  %v730_v18 = vsub.f32 %v666_v6, %v3021_v34  ;;  %1109 = vlog2.f32 %v3022_v38  ;;  %v774_v52 = vmul.f32 0.6931472, %v1098_v24  ;;  %v3028_v24 = vld [vmem:[#allocation133_spill] sm:$0xff] }
  0xd6   :  { %v1100_v54 = vpop.eup %1099  ;;  %v824_v53 = vadd.f32 %v770_v28, %v728_v62  ;;  %v855_v56 = vmul.f32 %v822_v48, %v2404_v9  ;;  %v884_v1 = vadd.f32 %v883_v27, %v853_v31  ;;  %v2463_v47 = vadd.f32 %v3023_v17, %v2331_v13  ;;  %v3026_v9 = vld [vmem:[#allocation106_spill] sm:$0xff]  ;;  %v1154_v48 = vld [vmem:[#allocation3 + $0x78] sm:$0xff] }
  0xd7   :  { %v1102_v59 = vpop.eup %1101  ;;  %v669_v29 = vmax.f32 %v1153_v32, 0.0  ;;  %v731_v26 = vsub.f32 %v667_v14, %v3024_v19  ;;  %1111 = vlog2.f32 %v3025_v37  ;;  %v776_v15 = vmul.f32 0.6931472, %v1100_v54  ;;  %v3027_v13 = vld [vmem:[#allocation38_spill] sm:$0xff]  ;;  %v3031_v27 = vld [vmem:[#allocation136_spill] sm:$0xff] }
  0xd8   :  { %v825_v6 = vadd.f32 %v772_v45, %v729_v41  ;;  %v856_v39 = vmul.f32 %v823_v58, %v2408_v55  ;;  %v885_v30 = vadd.f32 %v884_v1, %v854_v63  ;;  %v2470_v28 = vadd.f32 %v3026_v9, %v2335_v25  ;;  %v3029_v55 = vld [vmem:[#allocation107_spill] sm:$0xff]  ;;  %v1155_v45 = vld [vmem:[#allocation3 + $0x80] sm:$0xff]  ;;  %v1156_v38 = vld [vmem:[#allocation3 + $0x88] sm:$0xff] }
  0xd9   :  { %v1104_v62 = vpop.eup %1103  ;;  %v670_v31 = vmax.f32 %v1154_v48, 0.0  ;;  %v732_v8 = vsub.f32 %v668_v51, %v3027_v13  ;;  %1113 = vlog2.f32 %v3028_v24  ;;  %v778_v22 = vmul.f32 0.6931472, %v1102_v59  ;;  %v3030_v25 = vld [vmem:[#allocation39_spill] sm:$0xff] }
  0xda   :  { %v826_v10 = vadd.f32 %v774_v52, %v730_v18  ;;  %v857_v14 = vmul.f32 %v824_v53, %v2414_v23  ;;  %v886_v42 = vadd.f32 %v885_v30, %v855_v56  ;;  %v2477_v4 = vadd.f32 %v3029_v55, %v2339_v11  ;;  %v3032_v23 = vld [vmem:[#allocation159_spill] sm:$0xff]  ;;  %v3033_v11 = vld [vmem:[#allocation41_spill] sm:$0xff] }
  0xdb   :  { %v1106_v41 = vpop.eup %1105  ;;  %v671_v58 = vmax.f32 %v1155_v45, 0.0  ;;  %v733_v63 = vsub.f32 %v669_v29, %v3030_v25  ;;  %1115 = vlog2.f32 %v3031_v27  ;;  %v780_v54 = vmul.f32 0.6931472, %v1104_v62  ;;  %v3034_v56 = vld [vmem:[#allocation139_spill] sm:$0xff]  ;;  %v3043_v27 = vld [vmem:[#allocation148_spill] sm:$0xff] }
  0xdc   :  { %v827_v44 = vadd.f32 %v776_v15, %v731_v26  ;;  %v858_v16 = vmul.f32 %v825_v6, %v2420_v49  ;;  %v887_v51 = vadd.f32 %v886_v42, %v856_v39  ;;  %v2484_v18 = vadd.f32 %v3032_v23, %v2344_v61  ;;  %v3035_v49 = vld [vmem:[#allocation161_spill] sm:$0xff]  ;;  %v1157_v26 = vld [vmem:[#allocation3 + $0x90] sm:$0xff]  ;;  %v1158_v13 = vld [vmem:[#allocation3 + $0x98] sm:$0xff] }
  0xdd   :  { %v1108_v34 = vpop.eup %1107  ;;  %v672_v52 = vmax.f32 %v1156_v38, 0.0  ;;  %v734_v53 = vsub.f32 %v670_v31, %v3033_v11  ;;  %1117 = vlog2.f32 %v3034_v56  ;;  %v782_v1 = vmul.f32 0.6931472, %v1106_v41  ;;  %v3036_v61 = vld [vmem:[#allocation42_spill] sm:$0xff]  ;;  %v3044_v38 = vld [vmem:[#allocation156_spill] sm:$0xff] }
  0xde   :  { %v828_v59 = vadd.f32 %v778_v22, %v732_v8  ;;  %v859_v17 = vmul.f32 %v826_v10, %v2424_v43  ;;  %v888_v32 = vadd.f32 %v887_v51, %v857_v14  ;;  %v2491_v19 = vadd.f32 %v3035_v49, %v2348_v46  ;;  %v3037_v6 = vld [vmem:[#allocation142_spill] sm:$0xff]  ;;  %v3039_v46 = vld [vmem:[#allocation44_spill] sm:$0xff]  ;;  %v3040_v22 = vld [vmem:[#allocation145_spill] sm:$0xff] }
  0xdf   :  { %v1110_v29 = vpop.eup %1109  ;;  %v673_v37 = vmax.f32 %v1157_v26, 0.0  ;;  %v735_v15 = vsub.f32 %v671_v58, %v3036_v61  ;;  %1119 = vlog2.f32 %v3037_v6  ;;  %v784_v39 = vmul.f32 0.6931472, %v1108_v34  ;;  %v3038_v43 = vld [vmem:[#allocation162_spill] sm:$0xff]  ;;  %v1159_v58 = vld [vmem:[#allocation3 + $0xa0] sm:$0xff] }
  0xe0   :  { %v829_v30 = vadd.f32 %v780_v54, %v733_v63  ;;  %v860_v62 = vmul.f32 %v827_v44, %v2430_v3  ;;  %v889_v9 = vadd.f32 %v888_v32, %v858_v16  ;;  %v2498_v31 = vadd.f32 %v3038_v43, %v2352_v21  ;;  %v3041_v3 = vld [vmem:[#allocation165_spill] sm:$0xff]  ;;  %v3045_v11 = vld [vmem:[#allocation48_spill] sm:$0xff] }
  0xe1   :  { %v1112_v48 = vpop.eup %1111  ;;  %v674_v8 = vmax.f32 %v1158_v13, 0.0  ;;  %v736_v24 = vsub.f32 %v672_v52, %v3039_v46  ;;  %1121 = vlog2.f32 %v3040_v22  ;;  %v786_v10 = vmul.f32 0.6931472, %v1110_v29  ;;  %v3042_v21 = vld [vmem:[#allocation45_spill] sm:$0xff]  ;;  %v1161_v29 = vld [vmem:[#allocation3 + $0xb0] sm:$0xff]  ;;  %v3050_v13 = vld [vmem:[#allocation160_spill] sm:$0xff] }
  0xe2   :  { %v830_v14 = vadd.f32 %v782_v1, %v734_v53  ;;  %v861_v42 = vmul.f32 %v828_v59, %v2436_v35  ;;  %v890_v41 = vadd.f32 %v889_v9, %v859_v17  ;;  %v2505_v45 = vadd.f32 %v3041_v3, %v2356_v0  ;;  %v1160_v23 = vld [vmem:[#allocation3 + $0xa8] sm:$0xff]  ;;  %v3046_v0 = vld [vmem:[#allocation151_spill] sm:$0xff] }
  0xe3   :  { %v1114_v55 = vpop.eup %1113  ;;  %v675_v25 = vmax.f32 %v1159_v58, 0.0  ;;  %v737_v63 = vsub.f32 %v673_v37, %v3042_v21  ;;  %1123 = vlog2.f32 %v3043_v27  ;;  %v788_v54 = vmul.f32 0.6931472, %v1112_v48  ;;  %v3047_v26 = vld [vmem:[#allocation157_spill] sm:$0xff]  ;;  %v1162_v48 = vld [vmem:[#allocation3 + $0xb8] sm:$0xff]  ;;  %v3051_v46 = vld [vmem:[#allocation154_spill] sm:$0xff] }
  0xe4   :  { %v831_v44 = vadd.f32 %v784_v39, %v735_v15  ;;  %v862_v16 = vmul.f32 %v829_v30, %v2442_v5  ;;  %v891_v51 = vadd.f32 %v890_v41, %v860_v62  ;;  %v676_v35 = vmax.f32 %v1160_v23, 0.0  ;;  %v3048_v37 = vld [vmem:[#allocation49_spill] sm:$0xff]  ;;  %v3052_v3 = vld [vmem:[#allocation163_spill] sm:$0xff] }
  0xe5   :  { %v1116_v34 = vpop.eup %1115  ;;  %v708_v52 = vmul.f32 %v1160_v23, %v3044_v38  ;;  %v738_v53 = vsub.f32 %v674_v8, %v3045_v11  ;;  %1125 = vlog2.f32 %v3046_v0  ;;  %v790_v56 = vmul.f32 0.6931472, %v1114_v55  ;;  %v3049_v15 = vld [vmem:[#allocation153_spill] sm:$0xff] }
  0xe6   :  { %v832_v1 = vadd.f32 %v786_v10, %v736_v24  ;;  %v863_v59 = vmul.f32 %v830_v14, %v2449_v7  ;;  %v892_v17 = vadd.f32 %v891_v51, %v861_v42  ;;  %v677_v49 = vmax.f32 %v1161_v29, 0.0  ;;  %v1163_v41 = vld [vmem:[#allocation3 + $0xc0] sm:$0xff] }
  0xe7   :  { %v1118_v32 = vpop.eup %1117  ;;  %v709_v5 = vmul.f32 %v1161_v29, %v3047_v26  ;;  %v739_v61 = vsub.f32 %v675_v25, %v3048_v37  ;;  %1127 = vlog2.f32 %v3049_v15  ;;  %v792_v6 = vmul.f32 0.6931472, %v1116_v34  ;;  %v3053_v25 = vld [vmem:[#allocation155_spill] sm:$0xff]  ;;  %v3054_v34 = vld [vmem:[#allocation166_spill] sm:$0xff] }
  0xe8   :  { %v833_v39 = vadd.f32 %v788_v54, %v737_v63  ;;  %v864_v30 = vmul.f32 %v831_v44, %v2456_v33  ;;  %v893_v62 = vadd.f32 %v892_v17, %v862_v16  ;;  %v678_v43 = vmax.f32 %v1162_v48, 0.0  ;;  %v1164_v16 = vld [vmem:[#allocation3 + $0xc8] sm:$0xff] }
  0xe9   :  { %v1120_v9 = vpop.eup %1119  ;;  %v710_v7 = vmul.f32 %v1162_v48, %v3050_v13  ;;  %v740_v8 = vsub.f32 %v676_v35, %v708_v52  ;;  %1129 = vlog2.f32 %v3051_v46  ;;  %v794_v24 = vmul.f32 0.6931472, %v1118_v32  ;;  %v3055_v35 = vld [vmem:[#allocation158_spill] sm:$0xff]  ;;  %v3057_v32 = vld [vmem:[#allocation164_spill] sm:$0xff] }
  0xea   :  { %v834_v22 = vadd.f32 %v790_v56, %v738_v53  ;;  %v865_v10 = vmul.f32 %v832_v1, %v2463_v47  ;;  %v894_v14 = vadd.f32 %v893_v62, %v863_v59  ;;  %v679_v55 = vmax.f32 %v1163_v41, 0.0  ;;  %v1165_v56 = vld [vmem:[#allocation3 + $0xd0] sm:$0xff]  ;;  %v3056_v59 = vld [vmem:[#allocation168_spill] sm:$0xff] }
  0xeb   :  { %v1122_v42 = vpop.eup %1121  ;;  %v711_v58 = vmul.f32 %v1163_v41, %v3052_v3  ;;  %v741_v33 = vsub.f32 %v677_v49, %v709_v5  ;;  %1131 = vlog2.f32 %v3053_v25  ;;  %v796_v21 = vmul.f32 0.6931472, %v1120_v9  ;;  %v1167_v46 = vld [vmem:[#allocation3 + $0xe0] sm:$0xff]  ;;  %v1168_v25 = vld [vmem:[#allocation3 + $0xe8] sm:$0xff] }
  0xec   :  { %v835_v63 = vadd.f32 %v792_v6, %v739_v61  ;;  %v866_v27 = vmul.f32 %v833_v39, %v2470_v28  ;;  %v895_v54 = vadd.f32 %v894_v14, %v864_v30  ;;  %v680_v51 = vmax.f32 %v1164_v16, 0.0  ;;  %v1166_v61 = vld [vmem:[#allocation3 + $0xd8] sm:$0xff]  ;;  %v3058_v6 = vld [vmem:[#allocation169_spill] sm:$0xff]  ;;  %v141_v14 = vld [vmem:[#allocation6 + $0xf0] sm:$0xff] }
  0xed   :  { %v1124_v44 = vpop.eup %1123  ;;  %v712_v23 = vmul.f32 %v1164_v16, %v3054_v34  ;;  %v742_v47 = vsub.f32 %v678_v43, %v710_v7  ;;  %1133 = vlog2.f32 %v3055_v35  ;;  %v798_v38 = vmul.f32 0.6931472, %v1122_v42  ;;  %v3059_v30 = vld [vmem:[#allocation167_spill] sm:$0xff]  ;;  %v3060_v7 = vld [vmem:[#allocation13_spill] sm:$0xff] }
  0xee   :  { %v836_v52 = vadd.f32 %v794_v24, %v740_v8  ;;  %v867_v11 = vmul.f32 %v834_v22, %v2477_v4  ;;  %v896_v53 = vadd.f32 %v895_v54, %v865_v10  ;;  %v681_v1 = vmax.f32 %v1165_v56, 0.0  ;;  %v3061_v24 = vld [vmem:[#allocation16_spill] sm:$0xff]  ;;  %v1169_v35 = vld [vmem:[#allocation3 + $0xf0] sm:$0xff] }
  0xef   :  { %v1126_v0 = vpop.eup %1125  ;;  %v713_v17 = vmul.f32 %v1165_v56, %v3056_v59  ;;  %v743_v28 = vsub.f32 %v679_v55, %v711_v58  ;;  %1135 = vlog2.f32 %v3057_v32  ;;  %v800_v29 = vmul.f32 0.6931472, %v1124_v44  ;;  %v142_v54 = vld [vmem:[#allocation6 + $0xf8] sm:$0xff]  ;;  %v3065_v59 = vld [vmem:[#allocation17_spill] sm:$0xff] }
  0xf0   :  { %v837_v49 = vadd.f32 %v796_v21, %v741_v33  ;;  %v868_v26 = vmul.f32 %v835_v63, %v2484_v18  ;;  %v897_v5 = vadd.f32 %v896_v53, %v866_v27  ;;  %v682_v15 = vmax.f32 %v1166_v61, 0.0  ;;  %v3062_v33 = vld [vmem:[#allocation14_spill] sm:$0xff]  ;;  %v3063_v63 = vld [vmem:[#allocation72_spill] sm:$0xff] }
  0xf1   :  { %v1128_v37 = vpop.eup %1127  ;;  %v714_v39 = vmul.f32 %v1166_v61, %v3058_v6  ;;  %v744_v4 = vsub.f32 %v680_v51, %v712_v23  ;;  %1137 = vlog2.f32 %v3059_v30  ;;  %v802_v62 = vmul.f32 0.6931472, %v1126_v0  ;;  %v3066_v61 = vld [vmem:[#allocation150_spill] sm:$0xff] }
  0xf2   :  { %v838_v9 = vadd.f32 %v798_v38, %v742_v47  ;;  %v869_v48 = vmul.f32 %v836_v52, %v2491_v19  ;;  %v898_v43 = vadd.f32 %v897_v5, %v867_v11  ;;  %v647_v8 = vadd.f32 %v3060_v7, %v2360_v2  ;;  %v3064_v47 = vld [vmem:[#allocation15_spill] sm:$0xff]  ;;  %v3068_v30 = vld [vmem:[#allocation74_spill] sm:$0xff]  ;;  %v3069_v7 = vld [vmem:[#allocation152_spill] sm:$0xff] }
  0xf3   :  { %v1130_v13 = vpop.eup %1129  ;;  %v683_v18 = vmax.f32 %v1167_v46, 0.0  ;;  %v715_v22 = vmul.f32 %v1167_v46, %v3061_v24  ;;  %v745_v10 = vsub.f32 %v681_v1, %v713_v17  ;;  %v804_v42 = vmul.f32 0.6931472, %v1128_v37 }
  0xf4   :  { %v839_v41 = vadd.f32 %v800_v29, %v743_v28  ;;  %v870_v55 = vmul.f32 %v837_v49, %v2498_v31  ;;  %v899_v3 = vadd.f32 %v898_v43, %v868_v26  ;;  %v648_v19 = vadd.f32 %v3062_v33, %v2365_v57  ;;  %v1170_v28 = vld [vmem:[#allocation3 + $0xf8] sm:$0xff] }
  0xf5   :  { %v1132_v58 = vpop.eup %1131  ;;  %v684_v21 = vmax.f32 %v1168_v25, 0.0  ;;  %v716_v27 = vmul.f32 %v1168_v25, %v3063_v63  ;;  %v746_v2 = vsub.f32 %v682_v15, %v714_v39  ;;  %v806_v44 = vmul.f32 0.6931472, %v1130_v13  ;;  %v1171_v39 = vld [vmem:[#allocation8 + $0xf0] sm:$0xff] }
  0xf6   :  { %v840_v16 = vadd.f32 %v802_v62, %v744_v4  ;;  %v871_v51 = vmul.f32 %v838_v9, %v2505_v45  ;;  %v900_v34 = vadd.f32 %v899_v3, %v869_v48  ;;  %v649_v31 = vadd.f32 %v3064_v47, %v2369_v12 }
  0xf7   :  { %v1134_v23 = vpop.eup %1133  ;;  %v685_v38 = vmax.f32 %v1169_v35, 0.0  ;;  %v717_v52 = vmul.f32 %v1169_v35, %v141_v14  ;;  %v747_v11 = vsub.f32 %v683_v18, %v715_v22  ;;  %v808_v57 = vmul.f32 0.6931472, %v1132_v58  ;;  %v1172_v18 = vld [vmem:[#allocation8 + $0xf8] sm:$0xff]  ;;  %v3071_v22 = vld [vmem:[#allocation18_spill] sm:$0xff] }
  0xf8   :  { %v841_v53 = vadd.f32 %v804_v42, %v745_v10  ;;  %v872_v0 = vmul.f32 %v839_v41, %v647_v8  ;;  %v901_v56 = vadd.f32 %v900_v34, %v870_v55  ;;  %v650_v17 = vadd.f32 %v3065_v59, %v2373_v60 }
  0xf9   :  { %v1136_v1 = vpop.eup %1135  ;;  %v686_v32 = vmax.f32 %v1170_v28, 0.0  ;;  %v718_v45 = vmul.f32 %v1170_v28, %v142_v54  ;;  %v748_v29 = vsub.f32 %v684_v21, %v716_v27  ;;  %v810_v49 = vmul.f32 0.6931472, %v1134_v23 }
  0xfa   :  { %v842_v26 = vadd.f32 %v806_v44, %v746_v2  ;;  %v873_v5 = vmul.f32 %v840_v16, %v648_v19  ;;  %v902_v12 = vadd.f32 %v901_v56, %v871_v51  ;;  %v3067_v15 = vsub.f32 1.0, %v3066_v61 }
  0xfb   :  { %v1138_v37 = vpop.eup %1137  ;;  %v621_v4 = vmul.f32 %v1171_v39, %v141_v14  ;;  %v651_v62 = vadd.f32 %v3068_v30, %v2377_v36  ;;  %v749_v9 = vsub.f32 %v685_v38, %v717_v52  ;;  %v812_v60 = vmul.f32 0.6931472, %v1136_v1 }
  0xfc   :  { %v589_v6 = vmul.f32 %v3067_v15, %v2265_v20  ;;  %v843_v48 = vadd.f32 %v808_v57, %v747_v11  ;;  %v874_v43 = vmul.f32 %v841_v53, %v649_v31  ;;  %v903_v13 = vadd.f32 %v902_v12, %v872_v0  ;;  %v847_v31 = vld [vmem:[#allocation2] sm:$0x1] }
  0xfd   :  { %v3070_v8 = vsub.f32 1.0, %v3069_v7  ;;  %v622_v24 = vmul.f32 %v1172_v18, %v142_v54  ;;  %v652_v10 = vadd.f32 %v3071_v22, %v2381_v40  ;;  %v750_v20 = vsub.f32 %v686_v32, %v718_v45 }
  0xfe   :  { %v814_v42 = vmul.f32 0.6931472, %v1138_v37  ;;  %v844_v14 = vadd.f32 %v810_v49, %v748_v29  ;;  %v875_v41 = vmul.f32 %v842_v26, %v650_v17  ;;  %v904_v55 = vadd.f32 %v903_v13, %v873_v5 }
  0xff   :  { %v590_v46 = vmul.f32 %v3070_v8, %v2268_v50  ;;  %v653_v36 = vadd.f32 %v621_v4, %v589_v6  ;;  %v845_v3 = vadd.f32 %v812_v60, %v749_v9  ;;  %v876_v58 = vmul.f32 %v843_v48, %v651_v62 }
 0x100   :  { %v905_v33 = vadd.f32 %v904_v55, %v874_v43  ;;  %v846_v25 = vadd.f32 %v814_v42, %v750_v20  ;;  %v877_v21 = vmul.f32 %v844_v14, %v652_v10 }
 0x101   :  { %v654_v19 = vadd.f32 %v622_v24, %v590_v46  ;;  %v878_v27 = vmul.f32 %v845_v3, %v653_v36 }
 0x102   :  { %v906_v63 = vadd.f32 %v905_v33, %v875_v41 }
 0x103   :  { %v879_v2 = vmul.f32 %v846_v25, %v654_v19 }
 0x104   :  { %v907_v50 = vadd.f32 %v906_v63, %v876_v58 }
 0x106   :  { %v908_v54 = vadd.f32 %v907_v50, %v877_v21 }
 0x108   :  { %v909_v44 = vadd.f32 %v908_v54, %v878_v27 }
 0x10a   :  { %v910_v16 = vadd.f32 %v909_v44, %v879_v2 }
 0x10c   :  { %v911_v40 = vrot.slane %v910_v16, 4 }
 0x10e   :  { %v912_v51 = vadd.f32 %v911_v40, %v910_v16 }
 0x110   :  { %v913_v34 = vrot.slane %v912_v51, 2 }
 0x112   :  { %v914_v23 = vadd.f32 %v913_v34, %v912_v51 }
 0x114   :  { %v915_v47 = vrot.slane %v914_v23, 1 }
 0x116   :  { %v916_v35 = vadd.f32 %v915_v47, %v914_v23 }
 0x118   :  { %v917_v38 = vadd.f32 %v916_v35, %v847_v31 }
 0x11a   :  { %918 = vst [vmem:[#allocation2] sm:$0x1] %v917_v38 }
 0x121   :  { %v922_v52 = vld [vmem:[#allocation2] sm:$0x1] }
 0x122   :  { %923 = vst [vmem:[#allocation9] sm:$0x1] %v922_v52 }
 0x123   :  { %1250 = shalt.err (!%p1247_p0)
}
 0x124   :  { %s1251_s26 = scalar_lea.hbm %s2570_s3, 16 }
 0x125   :  { %p1252_p1 = scmp.ne.s32.totalorder %s2570_s3, %s1251_s26  ;;  %p1255_p2 = scmp.lt.u32.totalorder %s1251_s26, %s2570_s3 }
 0x127   :  { %p1257_p3 = pnand %p1255_p2, %p1252_p1 }
 0x129   :  { %1260 = shalt.err (!%p1257_p3)
}
 0x12a   :  { %933 = dma.vmem_to_hbm [thread:$0]  %s931_s21, 16, %s2570_s3, [#allocation5]  }
 0x12b   :  { %1265 = dma.done.wait [#allocation5], 16  }
 0x12c   :  { %1266 = vsyncadd [#allocation5], 4294967280 }
 0x12d   :  { %937 = vsyncpa [#allocation4], 1 }
 0x12e   :  { %938 = vsyncpa [#allocation7], 1 }
 0x12f   :  { %939 = vsyncpa [#allocation5], 1 }

</bundles_post_ra>
